<compile_context>
chip_gen: v5e
topology: v5e:2x2
jax: 0.10.0
libtpu: 0.0.40
codegen_flags: <defaults>
</compile_context>

<pallas_src>
import jax
import jax.numpy as jnp
import numpy as np
from jax.experimental import pallas as pl
from jax.experimental.pallas import tpu as pltpu

N_CHANNELS = 2
N_KERNELS = 100
K_CHUNK = 8            # sublane chunk size
LEAKY_SLOPE = 0.05


def _round_up(a, m):
    return ((a + m - 1) // m) * m


def _lolo_kernel(xT_ref, lwT_ref, lbT_ref, fwT_ref, fbT_ref, w2T_ref, b2_ref, o_ref):
    # xT_ref : (C, B_TILE)        lane-dense batch tile
    # lwT/lbT/fwT : (K_pad, C)    per-channel Linear(1,K) weights/biases, fusion weights
    # fbT/w2T : (K_pad, 1)        fusion bias / final Linear(K,1) weight
    # b2_ref : (1, 1) in SMEM     final bias scalar
    # o_ref  : (1, B_TILE)        lane-dense output row
    bt = xT_ref.shape[1]
    kp = lwT_ref.shape[0]
    n_chunks = kp // K_CHUNK

    # Online K-reduction accumulator: sum_k y[k, b] * w2[k] folded chunk-by-chunk
    # into one (8, bt) block; sublane-reduced once at the very end.
    red = jnp.zeros((K_CHUNK, bt), jnp.float32)

    # Static loop over K sublane chunks: all intermediates are (8, bt), keeping
    # the live-vreg set bounded (no (K_pad, bt) temps, no spill passes).
    for j in range(n_chunks):
        r0, r1 = j * K_CHUNK, (j + 1) * K_CHUNK
        fb = fbT_ref[r0:r1, :]                        # (8, 1)
        w2 = w2T_ref[r0:r1, :]                        # (8, 1)

        acc = None                                    # no zero-fill init pass
        for c in range(N_CHANNELS):
            x_c = xT_ref[c:c + 1, :]                  # (1, bt) sublane-bcast in ops
            lw_c = lwT_ref[r0:r1, c:c + 1]            # (8, 1)  lane-bcast in ops
            lb_c = lbT_ref[r0:r1, c:c + 1]
            fw_c = fwT_ref[r0:r1, c:c + 1]
            # z[k, b] = x[b, c] * lolo_w[c, k] + lolo_b[c, k]
            z = x_c * lw_c + lb_c                     # (8, bt)
            # 'invsquare' activation 1/(1+z^2); approx EUP reciprocal (hot path).
            h = pl.reciprocal(1.0 + z * z, approx=True)
            t = h * fw_c
            acc = t if acc is None else acc + t       # channel fusion

        fused = acc + fb                              # + fusion bias (one pass)
        y = jnp.maximum(fused, LEAKY_SLOPE * fused)   # LeakyReLU(0.05), 0<slope<1
        red = red + y * w2                            # online piece of Linear(K,1)

    # Final K reduction over sublanes (XLU) + bias; exact sigmoid on the tiny
    # (1, bt) row (approx reciprocal here would only cost accuracy, not time).
    logits = jnp.sum(red, axis=0, keepdims=True) + b2_ref[0, 0]
    o_ref[...] = 1.0 / (1.0 + jnp.exp(-logits))


def _choose_batch_tiling(B, max_b_tile):
    """Pick (b_tile, b_pad): bound padding waste, amortize per-grid-step
    overhead with large tiles, and guarantee >=2 grid steps whenever B spans
    >=2 lane groups so v7x megacore ('parallel') sharding fires."""
    b128 = _round_up(B, 128)
    n_groups = b128 // 128
    if n_groups >= 2:
        n_steps = max(2, pl.cdiv(b128, max_b_tile))
        b_tile = _round_up(pl.cdiv(b128, n_steps), 128)
    else:
        b_tile = b128
    b_pad = _round_up(b128, b_tile)
    return b_tile, b_pad


def model_lolo_forward(x, params, *, max_b_tile=2048):
    """x: (B, 2) float32 -> (B, 1) float32 sigmoid probabilities."""
    lw, lb, fw, fb, w2, b2 = params
    B = x.shape[0]
    C, K = lw.shape
    assert C == N_CHANNELS and K == N_KERNELS

    k_pad = _round_up(K, K_CHUNK)                       # 100 -> 104 dense sublanes
    b_tile, b_pad = _choose_batch_tiling(B, max_b_tile)
    grid = (b_pad // b_tile,)

    # Lane-major batch: transpose + zero-pad x to (C, b_pad).
    xT = jnp.zeros((C, b_pad), jnp.float32).at[:, :B].set(x.T.astype(jnp.float32))

    def to_kp(a):
        # (rows, K) -> (k_pad, rows), zero-padded along K.
        # INVARIANT: pad rows K..k_pad-1 MUST be exactly 0.  lw/lb pads give
        # h = 1/(1+0) = 1, which is harmless only because the matching fw, fb
        # and w2 pad rows are 0 and therefore contribute nothing.
        aT = a.T.astype(jnp.float32)
        return jnp.zeros((k_pad, aT.shape[1]), jnp.float32).at[:K, :].set(aT)

    lwT, lbT, fwT = to_kp(lw), to_kp(lb), to_kp(fw)
    fbT, w2T = to_kp(fb), to_kp(w2)
    b2s = b2.astype(jnp.float32).reshape(1, 1)

    const = lambda i: (0, 0)   # weights stay resident in VMEM across batch tiles

    out = pl.pallas_call(
        _lolo_kernel,
        out_shape=jax.ShapeDtypeStruct((1, b_pad), jnp.float32),
        grid=grid,
        in_specs=[
            pl.BlockSpec((C, b_tile), lambda i: (0, i)),           # x tile (pipelined)
            pl.BlockSpec((k_pad, C), const),                       # lolo_w
            pl.BlockSpec((k_pad, C), const),                       # lolo_b
            pl.BlockSpec((k_pad, C), const),                       # fusion_w
            pl.BlockSpec((k_pad, 1), const),                       # fusion_b
            pl.BlockSpec((k_pad, 1), const),                       # w2
            pl.BlockSpec(memory_space=pltpu.MemorySpace.SMEM),     # b2 scalar
        ],
        out_specs=pl.BlockSpec((1, b_tile), lambda i: (0, i)),     # lane-dense output
        compiler_params=pltpu.CompilerParams(
            dimension_semantics=("parallel",)),
    )(xT, lwT, lbT, fwT, fbT, w2T, b2s)

    return out[0, :B].reshape(B, 1)


def init_params(key):
    """Deterministic synthetic parameters matching the torch module's shapes."""
    ks = jax.random.split(key, 6)
    # per-channel Linear(1, 100): torch default init U(-1, 1) since fan_in=1
    lolo_w = jax.random.uniform(ks[0], (N_CHANNELS, N_KERNELS), jnp.float32, -1.0, 1.0)
    lolo_b = jax.random.uniform(ks[1], (N_CHANNELS, N_KERNELS), jnp.float32, -1.0, 1.0)
    # fusion_layer_w: torch shape (1, K, C) ~ U(-1, 1); stored here as (C, K)
    fusion_w = jax.random.uniform(ks[2], (N_CHANNELS, N_KERNELS), jnp.float32, -1.0, 1.0)
    # fusion_layer_b: (1, K) ~ U(-1, 1)
    fusion_b = jax.random.uniform(ks[3], (1, N_KERNELS), jnp.float32, -1.0, 1.0)
    # final Linear(100, 1): torch default init U(-1/sqrt(100), 1/sqrt(100))
    lim = 1.0 / np.sqrt(N_KERNELS)
    w2 = jax.random.uniform(ks[4], (1, N_KERNELS), jnp.float32, -lim, lim)
    b2 = jax.random.uniform(ks[5], (1, 1), jnp.float32, -lim, lim)
    return (lolo_w, lolo_b, fusion_w, fusion_b, w2, b2)


def reference_forward(x, params):
    """Pure-JAX reference of the torch forward (exact f32 math)."""
    lw, lb, fw, fb, w2, b2 = params
    acc = jnp.zeros((x.shape[0], N_KERNELS), jnp.float32)
    for c in range(N_CHANNELS):
        z = x[:, c:c + 1] * lw[c:c + 1, :] + lb[c:c + 1, :]
        h = 1.0 / (1.0 + z * z)
        acc = acc + h * fw[c:c + 1, :]
    fused = acc + fb
    y = jnp.where(fused >= 0.0, fused, LEAKY_SLOPE * fused)
    logits = y @ w2.T + b2
    return jax.nn.sigmoid(logits)


if __name__ == "__main__":
    key = jax.random.PRNGKey(0)
    k_x, k_p, k_x2 = jax.random.split(key, 3)

    params = init_params(k_p)

    # Small single-tile case (grid = 1).
    B = 8
    x = jax.random.normal(k_x, (B, N_CHANNELS), dtype=jnp.float32)
    out = jax.block_until_ready(model_lolo_forward(x, params))
    ref = jax.block_until_ready(reference_forward(x, params))
    # Tolerance tightened vs the previous 1e-2: the only approximation left is
    # the approx EUP reciprocal in the invsquare hot path (sigmoid is exact).
    np.testing.assert_allclose(np.asarray(out), np.asarray(ref), rtol=5e-3, atol=5e-3)
    assert out.shape == (B, 1)

    # Multi-tile case: exercises the >=2-step grid ('parallel' axis) and the
    # batch-padding path.
    B2 = 300
    x2 = jax.random.normal(k_x2, (B2, N_CHANNELS), dtype=jnp.float32)
    out2 = jax.block_until_ready(model_lolo_forward(x2, params))
    ref2 = jax.block_until_ready(reference_forward(x2, params))
    np.testing.assert_allclose(np.asarray(out2), np.asarray(ref2), rtol=5e-3, atol=5e-3)
    assert out2.shape == (B2, 1)

    print("KERNEL_OK")
</pallas_src>

<mosaic_0001>
module attributes {stable_mosaic.version = 11 : i64} {
  func.func @_lolo_kernel(%arg0: i32, %arg1: memref<2x128xf32, #tpu.memory_space<vmem>>, %arg2: memref<104x2xf32, #tpu.memory_space<vmem>>, %arg3: memref<104x2xf32, #tpu.memory_space<vmem>>, %arg4: memref<104x2xf32, #tpu.memory_space<vmem>>, %arg5: memref<104x1xf32, #tpu.memory_space<vmem>>, %arg6: memref<104x1xf32, #tpu.memory_space<vmem>>, %arg7: memref<1x1xf32, #tpu.memory_space<smem>>, %arg8: memref<1x128xf32, #tpu.memory_space<vmem>>) attributes {dimension_semantics = [#tpu.dimension_semantics<parallel>], iteration_bounds = array<i64: 1>, scalar_prefetch = 0 : i64, scratch_operands = 0 : i64, tpu.core_type = #tpu.core_type<tc>, window_params = [{transform_indices = @transform_0, window_bounds = array<i64: 2, 128>}, {pipeline_mode = #tpu.pipeline_mode<synchronous>, transform_indices = @transform_1, window_bounds = array<i64: 104, 2>}, {pipeline_mode = #tpu.pipeline_mode<synchronous>, transform_indices = @transform_2, window_bounds = array<i64: 104, 2>}, {pipeline_mode = #tpu.pipeline_mode<synchronous>, transform_indices = @transform_3, window_bounds = array<i64: 104, 2>}, {pipeline_mode = #tpu.pipeline_mode<synchronous>, transform_indices = @transform_4, window_bounds = array<i64: 104, 1>}, {pipeline_mode = #tpu.pipeline_mode<synchronous>, transform_indices = @transform_5, window_bounds = array<i64: 104, 1>}, {transform_indices = @transform_6, window_bounds = array<i64: 1, 1>}, {transform_indices = @transform_7, window_bounds = array<i64: 1, 128>}]} {
    %cst = arith.constant 0.000000e+00 : f32
    %0 = vector.broadcast %cst : f32 to vector<8x128xf32>
    %c0 = arith.constant 0 : index
    %c0_0 = arith.constant 0 : index
    %1 = vector.load %arg5[%c0, %c0_0] : memref<104x1xf32, #tpu.memory_space<vmem>>, vector<8x1xf32>
    %c0_1 = arith.constant 0 : index
    %c0_2 = arith.constant 0 : index
    %2 = vector.load %arg6[%c0_1, %c0_2] : memref<104x1xf32, #tpu.memory_space<vmem>>, vector<8x1xf32>
    %c0_3 = arith.constant 0 : index
    %c0_4 = arith.constant 0 : index
    %3 = vector.load %arg1[%c0_3, %c0_4] : memref<2x128xf32, #tpu.memory_space<vmem>>, vector<1x128xf32>
    %c0_5 = arith.constant 0 : index
    %c0_6 = arith.constant 0 : index
    %4 = vector.load %arg2[%c0_5, %c0_6] : memref<104x2xf32, #tpu.memory_space<vmem>>, vector<8x1xf32>
    %c0_7 = arith.constant 0 : index
    %c0_8 = arith.constant 0 : index
    %5 = vector.load %arg3[%c0_7, %c0_8] : memref<104x2xf32, #tpu.memory_space<vmem>>, vector<8x1xf32>
    %c0_9 = arith.constant 0 : index
    %c0_10 = arith.constant 0 : index
    %6 = vector.load %arg4[%c0_9, %c0_10] : memref<104x2xf32, #tpu.memory_space<vmem>>, vector<8x1xf32>
    %7 = vector.broadcast %3 : vector<1x128xf32> to vector<8x128xf32>
    %8 = vector.broadcast %4 : vector<8x1xf32> to vector<8x128xf32>
    %9 = arith.mulf %7, %8 : vector<8x128xf32>
    %10 = vector.broadcast %5 : vector<8x1xf32> to vector<8x128xf32>
    %11 = arith.addf %9, %10 : vector<8x128xf32>
    %12 = arith.mulf %11, %11 : vector<8x128xf32>
    %cst_11 = arith.constant 1.000000e+00 : f32
    %13 = vector.broadcast %cst_11 : f32 to vector<8x128xf32>
    %14 = arith.addf %13, %12 : vector<8x128xf32>
    %15 = tpu.reciprocal %14 {approx = true} : vector<8x128xf32> -> vector<8x128xf32>
    %16 = vector.broadcast %6 : vector<8x1xf32> to vector<8x128xf32>
    %17 = arith.mulf %15, %16 : vector<8x128xf32>
    %c1 = arith.constant 1 : index
    %c0_12 = arith.constant 0 : index
    %18 = vector.load %arg1[%c1, %c0_12] : memref<2x128xf32, #tpu.memory_space<vmem>>, vector<1x128xf32>
    %c0_13 = arith.constant 0 : index
    %c1_14 = arith.constant 1 : index
    %19 = vector.load %arg2[%c0_13, %c1_14] : memref<104x2xf32, #tpu.memory_space<vmem>>, vector<8x1xf32>
    %c0_15 = arith.constant 0 : index
    %c1_16 = arith.constant 1 : index
    %20 = vector.load %arg3[%c0_15, %c1_16] : memref<104x2xf32, #tpu.memory_space<vmem>>, vector<8x1xf32>
    %c0_17 = arith.constant 0 : index
    %c1_18 = arith.constant 1 : index
    %21 = vector.load %arg4[%c0_17, %c1_18] : memref<104x2xf32, #tpu.memory_space<vmem>>, vector<8x1xf32>
    %22 = vector.broadcast %18 : vector<1x128xf32> to vector<8x128xf32>
    %23 = vector.broadcast %19 : vector<8x1xf32> to vector<8x128xf32>
    %24 = arith.mulf %22, %23 : vector<8x128xf32>
    %25 = vector.broadcast %20 : vector<8x1xf32> to vector<8x128xf32>
    %26 = arith.addf %24, %25 : vector<8x128xf32>
    %27 = arith.mulf %26, %26 : vector<8x128xf32>
    %cst_19 = arith.constant 1.000000e+00 : f32
    %28 = vector.broadcast %cst_19 : f32 to vector<8x128xf32>
    %29 = arith.addf %28, %27 : vector<8x128xf32>
    %30 = tpu.reciprocal %29 {approx = true} : vector<8x128xf32> -> vector<8x128xf32>
    %31 = vector.broadcast %21 : vector<8x1xf32> to vector<8x128xf32>
    %32 = arith.mulf %30, %31 : vector<8x128xf32>
    %33 = arith.addf %17, %32 : vector<8x128xf32>
    %34 = vector.broadcast %1 : vector<8x1xf32> to vector<8x128xf32>
    %35 = arith.addf %33, %34 : vector<8x128xf32>
    %cst_20 = arith.constant 5.000000e-02 : f32
    %36 = vector.broadcast %cst_20 : f32 to vector<8x128xf32>
    %37 = arith.mulf %36, %35 : vector<8x128xf32>
    %38 = arith.maximumf %35, %37 : vector<8x128xf32>
    %39 = vector.broadcast %2 : vector<8x1xf32> to vector<8x128xf32>
    %40 = arith.mulf %38, %39 : vector<8x128xf32>
    %41 = arith.addf %0, %40 : vector<8x128xf32>
    %c8 = arith.constant 8 : index
    %c0_21 = arith.constant 0 : index
    %42 = vector.load %arg5[%c8, %c0_21] : memref<104x1xf32, #tpu.memory_space<vmem>>, vector<8x1xf32>
    %c8_22 = arith.constant 8 : index
    %c0_23 = arith.constant 0 : index
    %43 = vector.load %arg6[%c8_22, %c0_23] : memref<104x1xf32, #tpu.memory_space<vmem>>, vector<8x1xf32>
    %c0_24 = arith.constant 0 : index
    %c0_25 = arith.constant 0 : index
    %44 = vector.load %arg1[%c0_24, %c0_25] : memref<2x128xf32, #tpu.memory_space<vmem>>, vector<1x128xf32>
    %c8_26 = arith.constant 8 : index
    %c0_27 = arith.constant 0 : index
    %45 = vector.load %arg2[%c8_26, %c0_27] : memref<104x2xf32, #tpu.memory_space<vmem>>, vector<8x1xf32>
    %c8_28 = arith.constant 8 : index
    %c0_29 = arith.constant 0 : index
    %46 = vector.load %arg3[%c8_28, %c0_29] : memref<104x2xf32, #tpu.memory_space<vmem>>, vector<8x1xf32>
    %c8_30 = arith.constant 8 : index
    %c0_31 = arith.constant 0 : index
    %47 = vector.load %arg4[%c8_30, %c0_31] : memref<104x2xf32, #tpu.memory_space<vmem>>, vector<8x1xf32>
    %48 = vector.broadcast %44 : vector<1x128xf32> to vector<8x128xf32>
    %49 = vector.broadcast %45 : vector<8x1xf32> to vector<8x128xf32>
    %50 = arith.mulf %48, %49 : vector<8x128xf32>
    %51 = vector.broadcast %46 : vector<8x1xf32> to vector<8x128xf32>
    %52 = arith.addf %50, %51 : vector<8x128xf32>
    %53 = arith.mulf %52, %52 : vector<8x128xf32>
    %cst_32 = arith.constant 1.000000e+00 : f32
    %54 = vector.broadcast %cst_32 : f32 to vector<8x128xf32>
    %55 = arith.addf %54, %53 : vector<8x128xf32>
    %56 = tpu.reciprocal %55 {approx = true} : vector<8x128xf32> -> vector<8x128xf32>
    %57 = vector.broadcast %47 : vector<8x1xf32> to vector<8x128xf32>
    %58 = arith.mulf %56, %57 : vector<8x128xf32>
    %c1_33 = arith.constant 1 : index
    %c0_34 = arith.constant 0 : index
    %59 = vector.load %arg1[%c1_33, %c0_34] : memref<2x128xf32, #tpu.memory_space<vmem>>, vector<1x128xf32>
    %c8_35 = arith.constant 8 : index
    %c1_36 = arith.constant 1 : index
    %60 = vector.load %arg2[%c8_35, %c1_36] : memref<104x2xf32, #tpu.memory_space<vmem>>, vector<8x1xf32>
    %c8_37 = arith.constant 8 : index
    %c1_38 = arith.constant 1 : index
    %61 = vector.load %arg3[%c8_37, %c1_38] : memref<104x2xf32, #tpu.memory_space<vmem>>, vector<8x1xf32>
    %c8_39 = arith.constant 8 : index
    %c1_40 = arith.constant 1 : index
    %62 = vector.load %arg4[%c8_39, %c1_40] : memref<104x2xf32, #tpu.memory_space<vmem>>, vector<8x1xf32>
    %63 = vector.broadcast %59 : vector<1x128xf32> to vector<8x128xf32>
    %64 = vector.broadcast %60 : vector<8x1xf32> to vector<8x128xf32>
    %65 = arith.mulf %63, %64 : vector<8x128xf32>
    %66 = vector.broadcast %61 : vector<8x1xf32> to vector<8x128xf32>
    %67 = arith.addf %65, %66 : vector<8x128xf32>
    %68 = arith.mulf %67, %67 : vector<8x128xf32>
    %cst_41 = arith.constant 1.000000e+00 : f32
    %69 = vector.broadcast %cst_41 : f32 to vector<8x128xf32>
    %70 = arith.addf %69, %68 : vector<8x128xf32>
    %71 = tpu.reciprocal %70 {approx = true} : vector<8x128xf32> -> vector<8x128xf32>
    %72 = vector.broadcast %62 : vector<8x1xf32> to vector<8x128xf32>
    %73 = arith.mulf %71, %72 : vector<8x128xf32>
    %74 = arith.addf %58, %73 : vector<8x128xf32>
    %75 = vector.broadcast %42 : vector<8x1xf32> to vector<8x128xf32>
    %76 = arith.addf %74, %75 : vector<8x128xf32>
    %cst_42 = arith.constant 5.000000e-02 : f32
    %77 = vector.broadcast %cst_42 : f32 to vector<8x128xf32>
    %78 = arith.mulf %77, %76 : vector<8x128xf32>
    %79 = arith.maximumf %76, %78 : vector<8x128xf32>
    %80 = vector.broadcast %43 : vector<8x1xf32> to vector<8x128xf32>
    %81 = arith.mulf %79, %80 : vector<8x128xf32>
    %82 = arith.addf %41, %81 : vector<8x128xf32>
    %c16 = arith.constant 16 : index
    %c0_43 = arith.constant 0 : index
    %83 = vector.load %arg5[%c16, %c0_43] : memref<104x1xf32, #tpu.memory_space<vmem>>, vector<8x1xf32>
    %c16_44 = arith.constant 16 : index
    %c0_45 = arith.constant 0 : index
    %84 = vector.load %arg6[%c16_44, %c0_45] : memref<104x1xf32, #tpu.memory_space<vmem>>, vector<8x1xf32>
    %c0_46 = arith.constant 0 : index
    %c0_47 = arith.constant 0 : index
    %85 = vector.load %arg1[%c0_46, %c0_47] : memref<2x128xf32, #tpu.memory_space<vmem>>, vector<1x128xf32>
    %c16_48 = arith.constant 16 : index
    %c0_49 = arith.constant 0 : index
    %86 = vector.load %arg2[%c16_48, %c0_49] : memref<104x2xf32, #tpu.memory_space<vmem>>, vector<8x1xf32>
    %c16_50 = arith.constant 16 : index
    %c0_51 = arith.constant 0 : index
    %87 = vector.load %arg3[%c16_50, %c0_51] : memref<104x2xf32, #tpu.memory_space<vmem>>, vector<8x1xf32>
    %c16_52 = arith.constant 16 : index
    %c0_53 = arith.constant 0 : index
    %88 = vector.load %arg4[%c16_52, %c0_53] : memref<104x2xf32, #tpu.memory_space<vmem>>, vector<8x1xf32>
    %89 = vector.broadcast %85 : vector<1x128xf32> to vector<8x128xf32>
    %90 = vector.broadcast %86 : vector<8x1xf32> to vector<8x128xf32>
    %91 = arith.mulf %89, %90 : vector<8x128xf32>
    %92 = vector.broadcast %87 : vector<8x1xf32> to vector<8x128xf32>
    %93 = arith.addf %91, %92 : vector<8x128xf32>
    %94 = arith.mulf %93, %93 : vector<8x128xf32>
    %cst_54 = arith.constant 1.000000e+00 : f32
    %95 = vector.broadcast %cst_54 : f32 to vector<8x128xf32>
    %96 = arith.addf %95, %94 : vector<8x128xf32>
    %97 = tpu.reciprocal %96 {approx = true} : vector<8x128xf32> -> vector<8x128xf32>
    %98 = vector.broadcast %88 : vector<8x1xf32> to vector<8x128xf32>
    %99 = arith.mulf %97, %98 : vector<8x128xf32>
    %c1_55 = arith.constant 1 : index
    %c0_56 = arith.constant 0 : index
    %100 = vector.load %arg1[%c1_55, %c0_56] : memref<2x128xf32, #tpu.memory_space<vmem>>, vector<1x128xf32>
    %c16_57 = arith.constant 16 : index
    %c1_58 = arith.constant 1 : index
    %101 = vector.load %arg2[%c16_57, %c1_58] : memref<104x2xf32, #tpu.memory_space<vmem>>, vector<8x1xf32>
    %c16_59 = arith.constant 16 : index
    %c1_60 = arith.constant 1 : index
    %102 = vector.load %arg3[%c16_59, %c1_60] : memref<104x2xf32, #tpu.memory_space<vmem>>, vector<8x1xf32>
    %c16_61 = arith.constant 16 : index
    %c1_62 = arith.constant 1 : index
    %103 = vector.load %arg4[%c16_61, %c1_62] : memref<104x2xf32, #tpu.memory_space<vmem>>, vector<8x1xf32>
    %104 = vector.broadcast %100 : vector<1x128xf32> to vector<8x128xf32>
    %105 = vector.broadcast %101 : vector<8x1xf32> to vector<8x128xf32>
    %106 = arith.mulf %104, %105 : vector<8x128xf32>
    %107 = vector.broadcast %102 : vector<8x1xf32> to vector<8x128xf32>
    %108 = arith.addf %106, %107 : vector<8x128xf32>
    %109 = arith.mulf %108, %108 : vector<8x128xf32>
    %cst_63 = arith.constant 1.000000e+00 : f32
    %110 = vector.broadcast %cst_63 : f32 to vector<8x128xf32>
    %111 = arith.addf %110, %109 : vector<8x128xf32>
    %112 = tpu.reciprocal %111 {approx = true} : vector<8x128xf32> -> vector<8x128xf32>
    %113 = vector.broadcast %103 : vector<8x1xf32> to vector<8x128xf32>
    %114 = arith.mulf %112, %113 : vector<8x128xf32>
    %115 = arith.addf %99, %114 : vector<8x128xf32>
    %116 = vector.broadcast %83 : vector<8x1xf32> to vector<8x128xf32>
    %117 = arith.addf %115, %116 : vector<8x128xf32>
    %cst_64 = arith.constant 5.000000e-02 : f32
    %118 = vector.broadcast %cst_64 : f32 to vector<8x128xf32>
    %119 = arith.mulf %118, %117 : vector<8x128xf32>
    %120 = arith.maximumf %117, %119 : vector<8x128xf32>
    %121 = vector.broadcast %84 : vector<8x1xf32> to vector<8x128xf32>
    %122 = arith.mulf %120, %121 : vector<8x128xf32>
    %123 = arith.addf %82, %122 : vector<8x128xf32>
    %c24 = arith.constant 24 : index
    %c0_65 = arith.constant 0 : index
    %124 = vector.load %arg5[%c24, %c0_65] : memref<104x1xf32, #tpu.memory_space<vmem>>, vector<8x1xf32>
    %c24_66 = arith.constant 24 : index
    %c0_67 = arith.constant 0 : index
    %125 = vector.load %arg6[%c24_66, %c0_67] : memref<104x1xf32, #tpu.memory_space<vmem>>, vector<8x1xf32>
    %c0_68 = arith.constant 0 : index
    %c0_69 = arith.constant 0 : index
    %126 = vector.load %arg1[%c0_68, %c0_69] : memref<2x128xf32, #tpu.memory_space<vmem>>, vector<1x128xf32>
    %c24_70 = arith.constant 24 : index
    %c0_71 = arith.constant 0 : index
    %127 = vector.load %arg2[%c24_70, %c0_71] : memref<104x2xf32, #tpu.memory_space<vmem>>, vector<8x1xf32>
    %c24_72 = arith.constant 24 : index
    %c0_73 = arith.constant 0 : index
    %128 = vector.load %arg3[%c24_72, %c0_73] : memref<104x2xf32, #tpu.memory_space<vmem>>, vector<8x1xf32>
    %c24_74 = arith.constant 24 : index
    %c0_75 = arith.constant 0 : index
    %129 = vector.load %arg4[%c24_74, %c0_75] : memref<104x2xf32, #tpu.memory_space<vmem>>, vector<8x1xf32>
    %130 = vector.broadcast %126 : vector<1x128xf32> to vector<8x128xf32>
    %131 = vector.broadcast %127 : vector<8x1xf32> to vector<8x128xf32>
    %132 = arith.mulf %130, %131 : vector<8x128xf32>
    %133 = vector.broadcast %128 : vector<8x1xf32> to vector<8x128xf32>
    %134 = arith.addf %132, %133 : vector<8x128xf32>
    %135 = arith.mulf %134, %134 : vector<8x128xf32>
    %cst_76 = arith.constant 1.000000e+00 : f32
    %136 = vector.broadcast %cst_76 : f32 to vector<8x128xf32>
    %137 = arith.addf %136, %135 : vector<8x128xf32>
    %138 = tpu.reciprocal %137 {approx = true} : vector<8x128xf32> -> vector<8x128xf32>
    %139 = vector.broadcast %129 : vector<8x1xf32> to vector<8x128xf32>
    %140 = arith.mulf %138, %139 : vector<8x128xf32>
    %c1_77 = arith.constant 1 : index
    %c0_78 = arith.constant 0 : index
    %141 = vector.load %arg1[%c1_77, %c0_78] : memref<2x128xf32, #tpu.memory_space<vmem>>, vector<1x128xf32>
    %c24_79 = arith.constant 24 : index
    %c1_80 = arith.constant 1 : index
    %142 = vector.load %arg2[%c24_79, %c1_80] : memref<104x2xf32, #tpu.memory_space<vmem>>, vector<8x1xf32>
    %c24_81 = arith.constant 24 : index
    %c1_82 = arith.constant 1 : index
    %143 = vector.load %arg3[%c24_81, %c1_82] : memref<104x2xf32, #tpu.memory_space<vmem>>, vector<8x1xf32>
    %c24_83 = arith.constant 24 : index
    %c1_84 = arith.constant 1 : index
    %144 = vector.load %arg4[%c24_83, %c1_84] : memref<104x2xf32, #tpu.memory_space<vmem>>, vector<8x1xf32>
    %145 = vector.broadcast %141 : vector<1x128xf32> to vector<8x128xf32>
    %146 = vector.broadcast %142 : vector<8x1xf32> to vector<8x128xf32>
    %147 = arith.mulf %145, %146 : vector<8x128xf32>
    %148 = vector.broadcast %143 : vector<8x1xf32> to vector<8x128xf32>
    %149 = arith.addf %147, %148 : vector<8x128xf32>
    %150 = arith.mulf %149, %149 : vector<8x128xf32>
    %cst_85 = arith.constant 1.000000e+00 : f32
    %151 = vector.broadcast %cst_85 : f32 to vector<8x128xf32>
    %152 = arith.addf %151, %150 : vector<8x128xf32>
    %153 = tpu.reciprocal %152 {approx = true} : vector<8x128xf32> -> vector<8x128xf32>
    %154 = vector.broadcast %144 : vector<8x1xf32> to vector<8x128xf32>
    %155 = arith.mulf %153, %154 : vector<8x128xf32>
    %156 = arith.addf %140, %155 : vector<8x128xf32>
    %157 = vector.broadcast %124 : vector<8x1xf32> to vector<8x128xf32>
    %158 = arith.addf %156, %157 : vector<8x128xf32>
    %cst_86 = arith.constant 5.000000e-02 : f32
    %159 = vector.broadcast %cst_86 : f32 to vector<8x128xf32>
    %160 = arith.mulf %159, %158 : vector<8x128xf32>
    %161 = arith.maximumf %158, %160 : vector<8x128xf32>
    %162 = vector.broadcast %125 : vector<8x1xf32> to vector<8x128xf32>
    %163 = arith.mulf %161, %162 : vector<8x128xf32>
    %164 = arith.addf %123, %163 : vector<8x128xf32>
    %c32 = arith.constant 32 : index
    %c0_87 = arith.constant 0 : index
    %165 = vector.load %arg5[%c32, %c0_87] : memref<104x1xf32, #tpu.memory_space<vmem>>, vector<8x1xf32>
    %c32_88 = arith.constant 32 : index
    %c0_89 = arith.constant 0 : index
    %166 = vector.load %arg6[%c32_88, %c0_89] : memref<104x1xf32, #tpu.memory_space<vmem>>, vector<8x1xf32>
    %c0_90 = arith.constant 0 : index
    %c0_91 = arith.constant 0 : index
    %167 = vector.load %arg1[%c0_90, %c0_91] : memref<2x128xf32, #tpu.memory_space<vmem>>, vector<1x128xf32>
    %c32_92 = arith.constant 32 : index
    %c0_93 = arith.constant 0 : index
    %168 = vector.load %arg2[%c32_92, %c0_93] : memref<104x2xf32, #tpu.memory_space<vmem>>, vector<8x1xf32>
    %c32_94 = arith.constant 32 : index
    %c0_95 = arith.constant 0 : index
    %169 = vector.load %arg3[%c32_94, %c0_95] : memref<104x2xf32, #tpu.memory_space<vmem>>, vector<8x1xf32>
    %c32_96 = arith.constant 32 : index
    %c0_97 = arith.constant 0 : index
    %170 = vector.load %arg4[%c32_96, %c0_97] : memref<104x2xf32, #tpu.memory_space<vmem>>, vector<8x1xf32>
    %171 = vector.broadcast %167 : vector<1x128xf32> to vector<8x128xf32>
    %172 = vector.broadcast %168 : vector<8x1xf32> to vector<8x128xf32>
    %173 = arith.mulf %171, %172 : vector<8x128xf32>
    %174 = vector.broadcast %169 : vector<8x1xf32> to vector<8x128xf32>
    %175 = arith.addf %173, %174 : vector<8x128xf32>
    %176 = arith.mulf %175, %175 : vector<8x128xf32>
    %cst_98 = arith.constant 1.000000e+00 : f32
    %177 = vector.broadcast %cst_98 : f32 to vector<8x128xf32>
    %178 = arith.addf %177, %176 : vector<8x128xf32>
    %179 = tpu.reciprocal %178 {approx = true} : vector<8x128xf32> -> vector<8x128xf32>
    %180 = vector.broadcast %170 : vector<8x1xf32> to vector<8x128xf32>
    %181 = arith.mulf %179, %180 : vector<8x128xf32>
    %c1_99 = arith.constant 1 : index
    %c0_100 = arith.constant 0 : index
    %182 = vector.load %arg1[%c1_99, %c0_100] : memref<2x128xf32, #tpu.memory_space<vmem>>, vector<1x128xf32>
    %c32_101 = arith.constant 32 : index
    %c1_102 = arith.constant 1 : index
    %183 = vector.load %arg2[%c32_101, %c1_102] : memref<104x2xf32, #tpu.memory_space<vmem>>, vector<8x1xf32>
    %c32_103 = arith.constant 32 : index
    %c1_104 = arith.constant 1 : index
    %184 = vector.load %arg3[%c32_103, %c1_104] : memref<104x2xf32, #tpu.memory_space<vmem>>, vector<8x1xf32>
    %c32_105 = arith.constant 32 : index
    %c1_106 = arith.constant 1 : index
    %185 = vector.load %arg4[%c32_105, %c1_106] : memref<104x2xf32, #tpu.memory_space<vmem>>, vector<8x1xf32>
    %186 = vector.broadcast %182 : vector<1x128xf32> to vector<8x128xf32>
    %187 = vector.broadcast %183 : vector<8x1xf32> to vector<8x128xf32>
    %188 = arith.mulf %186, %187 : vector<8x128xf32>
    %189 = vector.broadcast %184 : vector<8x1xf32> to vector<8x128xf32>
    %190 = arith.addf %188, %189 : vector<8x128xf32>
    %191 = arith.mulf %190, %190 : vector<8x128xf32>
    %cst_107 = arith.constant 1.000000e+00 : f32
    %192 = vector.broadcast %cst_107 : f32 to vector<8x128xf32>
    %193 = arith.addf %192, %191 : vector<8x128xf32>
    %194 = tpu.reciprocal %193 {approx = true} : vector<8x128xf32> -> vector<8x128xf32>
    %195 = vector.broadcast %185 : vector<8x1xf32> to vector<8x128xf32>
    %196 = arith.mulf %194, %195 : vector<8x128xf32>
    %197 = arith.addf %181, %196 : vector<8x128xf32>
    %198 = vector.broadcast %165 : vector<8x1xf32> to vector<8x128xf32>
    %199 = arith.addf %197, %198 : vector<8x128xf32>
    %cst_108 = arith.constant 5.000000e-02 : f32
    %200 = vector.broadcast %cst_108 : f32 to vector<8x128xf32>
    %201 = arith.mulf %200, %199 : vector<8x128xf32>
    %202 = arith.maximumf %199, %201 : vector<8x128xf32>
    %203 = vector.broadcast %166 : vector<8x1xf32> to vector<8x128xf32>
    %204 = arith.mulf %202, %203 : vector<8x128xf32>
    %205 = arith.addf %164, %204 : vector<8x128xf32>
    %c40 = arith.constant 40 : index
    %c0_109 = arith.constant 0 : index
    %206 = vector.load %arg5[%c40, %c0_109] : memref<104x1xf32, #tpu.memory_space<vmem>>, vector<8x1xf32>
    %c40_110 = arith.constant 40 : index
    %c0_111 = arith.constant 0 : index
    %207 = vector.load %arg6[%c40_110, %c0_111] : memref<104x1xf32, #tpu.memory_space<vmem>>, vector<8x1xf32>
    %c0_112 = arith.constant 0 : index
    %c0_113 = arith.constant 0 : index
    %208 = vector.load %arg1[%c0_112, %c0_113] : memref<2x128xf32, #tpu.memory_space<vmem>>, vector<1x128xf32>
    %c40_114 = arith.constant 40 : index
    %c0_115 = arith.constant 0 : index
    %209 = vector.load %arg2[%c40_114, %c0_115] : memref<104x2xf32, #tpu.memory_space<vmem>>, vector<8x1xf32>
    %c40_116 = arith.constant 40 : index
    %c0_117 = arith.constant 0 : index
    %210 = vector.load %arg3[%c40_116, %c0_117] : memref<104x2xf32, #tpu.memory_space<vmem>>, vector<8x1xf32>
    %c40_118 = arith.constant 40 : index
    %c0_119 = arith.constant 0 : index
    %211 = vector.load %arg4[%c40_118, %c0_119] : memref<104x2xf32, #tpu.memory_space<vmem>>, vector<8x1xf32>
    %212 = vector.broadcast %208 : vector<1x128xf32> to vector<8x128xf32>
    %213 = vector.broadcast %209 : vector<8x1xf32> to vector<8x128xf32>
    %214 = arith.mulf %212, %213 : vector<8x128xf32>
    %215 = vector.broadcast %210 : vector<8x1xf32> to vector<8x128xf32>
    %216 = arith.addf %214, %215 : vector<8x128xf32>
    %217 = arith.mulf %216, %216 : vector<8x128xf32>
    %cst_120 = arith.constant 1.000000e+00 : f32
    %218 = vector.broadcast %cst_120 : f32 to vector<8x128xf32>
    %219 = arith.addf %218, %217 : vector<8x128xf32>
    %220 = tpu.reciprocal %219 {approx = true} : vector<8x128xf32> -> vector<8x128xf32>
    %221 = vector.broadcast %211 : vector<8x1xf32> to vector<8x128xf32>
    %222 = arith.mulf %220, %221 : vector<8x128xf32>
    %c1_121 = arith.constant 1 : index
    %c0_122 = arith.constant 0 : index
    %223 = vector.load %arg1[%c1_121, %c0_122] : memref<2x128xf32, #tpu.memory_space<vmem>>, vector<1x128xf32>
    %c40_123 = arith.constant 40 : index
    %c1_124 = arith.constant 1 : index
    %224 = vector.load %arg2[%c40_123, %c1_124] : memref<104x2xf32, #tpu.memory_space<vmem>>, vector<8x1xf32>
    %c40_125 = arith.constant 40 : index
    %c1_126 = arith.constant 1 : index
    %225 = vector.load %arg3[%c40_125, %c1_126] : memref<104x2xf32, #tpu.memory_space<vmem>>, vector<8x1xf32>
    %c40_127 = arith.constant 40 : index
    %c1_128 = arith.constant 1 : index
    %226 = vector.load %arg4[%c40_127, %c1_128] : memref<104x2xf32, #tpu.memory_space<vmem>>, vector<8x1xf32>
    %227 = vector.broadcast %223 : vector<1x128xf32> to vector<8x128xf32>
    %228 = vector.broadcast %224 : vector<8x1xf32> to vector<8x128xf32>
    %229 = arith.mulf %227, %228 : vector<8x128xf32>
    %230 = vector.broadcast %225 : vector<8x1xf32> to vector<8x128xf32>
    %231 = arith.addf %229, %230 : vector<8x128xf32>
    %232 = arith.mulf %231, %231 : vector<8x128xf32>
    %cst_129 = arith.constant 1.000000e+00 : f32
    %233 = vector.broadcast %cst_129 : f32 to vector<8x128xf32>
    %234 = arith.addf %233, %232 : vector<8x128xf32>
    %235 = tpu.reciprocal %234 {approx = true} : vector<8x128xf32> -> vector<8x128xf32>
    %236 = vector.broadcast %226 : vector<8x1xf32> to vector<8x128xf32>
    %237 = arith.mulf %235, %236 : vector<8x128xf32>
    %238 = arith.addf %222, %237 : vector<8x128xf32>
    %239 = vector.broadcast %206 : vector<8x1xf32> to vector<8x128xf32>
    %240 = arith.addf %238, %239 : vector<8x128xf32>
    %cst_130 = arith.constant 5.000000e-02 : f32
    %241 = vector.broadcast %cst_130 : f32 to vector<8x128xf32>
    %242 = arith.mulf %241, %240 : vector<8x128xf32>
    %243 = arith.maximumf %240, %242 : vector<8x128xf32>
    %244 = vector.broadcast %207 : vector<8x1xf32> to vector<8x128xf32>
    %245 = arith.mulf %243, %244 : vector<8x128xf32>
    %246 = arith.addf %205, %245 : vector<8x128xf32>
    %c48 = arith.constant 48 : index
    %c0_131 = arith.constant 0 : index
    %247 = vector.load %arg5[%c48, %c0_131] : memref<104x1xf32, #tpu.memory_space<vmem>>, vector<8x1xf32>
    %c48_132 = arith.constant 48 : index
    %c0_133 = arith.constant 0 : index
    %248 = vector.load %arg6[%c48_132, %c0_133] : memref<104x1xf32, #tpu.memory_space<vmem>>, vector<8x1xf32>
    %c0_134 = arith.constant 0 : index
    %c0_135 = arith.constant 0 : index
    %249 = vector.load %arg1[%c0_134, %c0_135] : memref<2x128xf32, #tpu.memory_space<vmem>>, vector<1x128xf32>
    %c48_136 = arith.constant 48 : index
    %c0_137 = arith.constant 0 : index
    %250 = vector.load %arg2[%c48_136, %c0_137] : memref<104x2xf32, #tpu.memory_space<vmem>>, vector<8x1xf32>
    %c48_138 = arith.constant 48 : index
    %c0_139 = arith.constant 0 : index
    %251 = vector.load %arg3[%c48_138, %c0_139] : memref<104x2xf32, #tpu.memory_space<vmem>>, vector<8x1xf32>
    %c48_140 = arith.constant 48 : index
    %c0_141 = arith.constant 0 : index
    %252 = vector.load %arg4[%c48_140, %c0_141] : memref<104x2xf32, #tpu.memory_space<vmem>>, vector<8x1xf32>
    %253 = vector.broadcast %249 : vector<1x128xf32> to vector<8x128xf32>
    %254 = vector.broadcast %250 : vector<8x1xf32> to vector<8x128xf32>
    %255 = arith.mulf %253, %254 : vector<8x128xf32>
    %256 = vector.broadcast %251 : vector<8x1xf32> to vector<8x128xf32>
    %257 = arith.addf %255, %256 : vector<8x128xf32>
    %258 = arith.mulf %257, %257 : vector<8x128xf32>
    %cst_142 = arith.constant 1.000000e+00 : f32
    %259 = vector.broadcast %cst_142 : f32 to vector<8x128xf32>
    %260 = arith.addf %259, %258 : vector<8x128xf32>
    %261 = tpu.reciprocal %260 {approx = true} : vector<8x128xf32> -> vector<8x128xf32>
    %262 = vector.broadcast %252 : vector<8x1xf32> to vector<8x128xf32>
    %263 = arith.mulf %261, %262 : vector<8x128xf32>
    %c1_143 = arith.constant 1 : index
    %c0_144 = arith.constant 0 : index
    %264 = vector.load %arg1[%c1_143, %c0_144] : memref<2x128xf32, #tpu.memory_space<vmem>>, vector<1x128xf32>
    %c48_145 = arith.constant 48 : index
    %c1_146 = arith.constant 1 : index
    %265 = vector.load %arg2[%c48_145, %c1_146] : memref<104x2xf32, #tpu.memory_space<vmem>>, vector<8x1xf32>
    %c48_147 = arith.constant 48 : index
    %c1_148 = arith.constant 1 : index
    %266 = vector.load %arg3[%c48_147, %c1_148] : memref<104x2xf32, #tpu.memory_space<vmem>>, vector<8x1xf32>
    %c48_149 = arith.constant 48 : index
    %c1_150 = arith.constant 1 : index
    %267 = vector.load %arg4[%c48_149, %c1_150] : memref<104x2xf32, #tpu.memory_space<vmem>>, vector<8x1xf32>
    %268 = vector.broadcast %264 : vector<1x128xf32> to vector<8x128xf32>
    %269 = vector.broadcast %265 : vector<8x1xf32> to vector<8x128xf32>
    %270 = arith.mulf %268, %269 : vector<8x128xf32>
    %271 = vector.broadcast %266 : vector<8x1xf32> to vector<8x128xf32>
    %272 = arith.addf %270, %271 : vector<8x128xf32>
    %273 = arith.mulf %272, %272 : vector<8x128xf32>
    %cst_151 = arith.constant 1.000000e+00 : f32
    %274 = vector.broadcast %cst_151 : f32 to vector<8x128xf32>
    %275 = arith.addf %274, %273 : vector<8x128xf32>
    %276 = tpu.reciprocal %275 {approx = true} : vector<8x128xf32> -> vector<8x128xf32>
    %277 = vector.broadcast %267 : vector<8x1xf32> to vector<8x128xf32>
    %278 = arith.mulf %276, %277 : vector<8x128xf32>
    %279 = arith.addf %263, %278 : vector<8x128xf32>
    %280 = vector.broadcast %247 : vector<8x1xf32> to vector<8x128xf32>
    %281 = arith.addf %279, %280 : vector<8x128xf32>
    %cst_152 = arith.constant 5.000000e-02 : f32
    %282 = vector.broadcast %cst_152 : f32 to vector<8x128xf32>
    %283 = arith.mulf %282, %281 : vector<8x128xf32>
    %284 = arith.maximumf %281, %283 : vector<8x128xf32>
    %285 = vector.broadcast %248 : vector<8x1xf32> to vector<8x128xf32>
    %286 = arith.mulf %284, %285 : vector<8x128xf32>
    %287 = arith.addf %246, %286 : vector<8x128xf32>
    %c56 = arith.constant 56 : index
    %c0_153 = arith.constant 0 : index
    %288 = vector.load %arg5[%c56, %c0_153] : memref<104x1xf32, #tpu.memory_space<vmem>>, vector<8x1xf32>
    %c56_154 = arith.constant 56 : index
    %c0_155 = arith.constant 0 : index
    %289 = vector.load %arg6[%c56_154, %c0_155] : memref<104x1xf32, #tpu.memory_space<vmem>>, vector<8x1xf32>
    %c0_156 = arith.constant 0 : index
    %c0_157 = arith.constant 0 : index
    %290 = vector.load %arg1[%c0_156, %c0_157] : memref<2x128xf32, #tpu.memory_space<vmem>>, vector<1x128xf32>
    %c56_158 = arith.constant 56 : index
    %c0_159 = arith.constant 0 : index
    %291 = vector.load %arg2[%c56_158, %c0_159] : memref<104x2xf32, #tpu.memory_space<vmem>>, vector<8x1xf32>
    %c56_160 = arith.constant 56 : index
    %c0_161 = arith.constant 0 : index
    %292 = vector.load %arg3[%c56_160, %c0_161] : memref<104x2xf32, #tpu.memory_space<vmem>>, vector<8x1xf32>
    %c56_162 = arith.constant 56 : index
    %c0_163 = arith.constant 0 : index
    %293 = vector.load %arg4[%c56_162, %c0_163] : memref<104x2xf32, #tpu.memory_space<vmem>>, vector<8x1xf32>
    %294 = vector.broadcast %290 : vector<1x128xf32> to vector<8x128xf32>
    %295 = vector.broadcast %291 : vector<8x1xf32> to vector<8x128xf32>
    %296 = arith.mulf %294, %295 : vector<8x128xf32>
    %297 = vector.broadcast %292 : vector<8x1xf32> to vector<8x128xf32>
    %298 = arith.addf %296, %297 : vector<8x128xf32>
    %299 = arith.mulf %298, %298 : vector<8x128xf32>
    %cst_164 = arith.constant 1.000000e+00 : f32
    %300 = vector.broadcast %cst_164 : f32 to vector<8x128xf32>
    %301 = arith.addf %300, %299 : vector<8x128xf32>
    %302 = tpu.reciprocal %301 {approx = true} : vector<8x128xf32> -> vector<8x128xf32>
    %303 = vector.broadcast %293 : vector<8x1xf32> to vector<8x128xf32>
    %304 = arith.mulf %302, %303 : vector<8x128xf32>
    %c1_165 = arith.constant 1 : index
    %c0_166 = arith.constant 0 : index
    %305 = vector.load %arg1[%c1_165, %c0_166] : memref<2x128xf32, #tpu.memory_space<vmem>>, vector<1x128xf32>
    %c56_167 = arith.constant 56 : index
    %c1_168 = arith.constant 1 : index
    %306 = vector.load %arg2[%c56_167, %c1_168] : memref<104x2xf32, #tpu.memory_space<vmem>>, vector<8x1xf32>
    %c56_169 = arith.constant 56 : index
    %c1_170 = arith.constant 1 : index
    %307 = vector.load %arg3[%c56_169, %c1_170] : memref<104x2xf32, #tpu.memory_space<vmem>>, vector<8x1xf32>
    %c56_171 = arith.constant 56 : index
    %c1_172 = arith.constant 1 : index
    %308 = vector.load %arg4[%c56_171, %c1_172] : memref<104x2xf32, #tpu.memory_space<vmem>>, vector<8x1xf32>
    %309 = vector.broadcast %305 : vector<1x128xf32> to vector<8x128xf32>
    %310 = vector.broadcast %306 : vector<8x1xf32> to vector<8x128xf32>
    %311 = arith.mulf %309, %310 : vector<8x128xf32>
    %312 = vector.broadcast %307 : vector<8x1xf32> to vector<8x128xf32>
    %313 = arith.addf %311, %312 : vector<8x128xf32>
    %314 = arith.mulf %313, %313 : vector<8x128xf32>
    %cst_173 = arith.constant 1.000000e+00 : f32
    %315 = vector.broadcast %cst_173 : f32 to vector<8x128xf32>
    %316 = arith.addf %315, %314 : vector<8x128xf32>
    %317 = tpu.reciprocal %316 {approx = true} : vector<8x128xf32> -> vector<8x128xf32>
    %318 = vector.broadcast %308 : vector<8x1xf32> to vector<8x128xf32>
    %319 = arith.mulf %317, %318 : vector<8x128xf32>
    %320 = arith.addf %304, %319 : vector<8x128xf32>
    %321 = vector.broadcast %288 : vector<8x1xf32> to vector<8x128xf32>
    %322 = arith.addf %320, %321 : vector<8x128xf32>
    %cst_174 = arith.constant 5.000000e-02 : f32
    %323 = vector.broadcast %cst_174 : f32 to vector<8x128xf32>
    %324 = arith.mulf %323, %322 : vector<8x128xf32>
    %325 = arith.maximumf %322, %324 : vector<8x128xf32>
    %326 = vector.broadcast %289 : vector<8x1xf32> to vector<8x128xf32>
    %327 = arith.mulf %325, %326 : vector<8x128xf32>
    %328 = arith.addf %287, %327 : vector<8x128xf32>
    %c64 = arith.constant 64 : index
    %c0_175 = arith.constant 0 : index
    %329 = vector.load %arg5[%c64, %c0_175] : memref<104x1xf32, #tpu.memory_space<vmem>>, vector<8x1xf32>
    %c64_176 = arith.constant 64 : index
    %c0_177 = arith.constant 0 : index
    %330 = vector.load %arg6[%c64_176, %c0_177] : memref<104x1xf32, #tpu.memory_space<vmem>>, vector<8x1xf32>
    %c0_178 = arith.constant 0 : index
    %c0_179 = arith.constant 0 : index
    %331 = vector.load %arg1[%c0_178, %c0_179] : memref<2x128xf32, #tpu.memory_space<vmem>>, vector<1x128xf32>
    %c64_180 = arith.constant 64 : index
    %c0_181 = arith.constant 0 : index
    %332 = vector.load %arg2[%c64_180, %c0_181] : memref<104x2xf32, #tpu.memory_space<vmem>>, vector<8x1xf32>
    %c64_182 = arith.constant 64 : index
    %c0_183 = arith.constant 0 : index
    %333 = vector.load %arg3[%c64_182, %c0_183] : memref<104x2xf32, #tpu.memory_space<vmem>>, vector<8x1xf32>
    %c64_184 = arith.constant 64 : index
    %c0_185 = arith.constant 0 : index
    %334 = vector.load %arg4[%c64_184, %c0_185] : memref<104x2xf32, #tpu.memory_space<vmem>>, vector<8x1xf32>
    %335 = vector.broadcast %331 : vector<1x128xf32> to vector<8x128xf32>
    %336 = vector.broadcast %332 : vector<8x1xf32> to vector<8x128xf32>
    %337 = arith.mulf %335, %336 : vector<8x128xf32>
    %338 = vector.broadcast %333 : vector<8x1xf32> to vector<8x128xf32>
    %339 = arith.addf %337, %338 : vector<8x128xf32>
    %340 = arith.mulf %339, %339 : vector<8x128xf32>
    %cst_186 = arith.constant 1.000000e+00 : f32
    %341 = vector.broadcast %cst_186 : f32 to vector<8x128xf32>
    %342 = arith.addf %341, %340 : vector<8x128xf32>
    %343 = tpu.reciprocal %342 {approx = true} : vector<8x128xf32> -> vector<8x128xf32>
    %344 = vector.broadcast %334 : vector<8x1xf32> to vector<8x128xf32>
    %345 = arith.mulf %343, %344 : vector<8x128xf32>
    %c1_187 = arith.constant 1 : index
    %c0_188 = arith.constant 0 : index
    %346 = vector.load %arg1[%c1_187, %c0_188] : memref<2x128xf32, #tpu.memory_space<vmem>>, vector<1x128xf32>
    %c64_189 = arith.constant 64 : index
    %c1_190 = arith.constant 1 : index
    %347 = vector.load %arg2[%c64_189, %c1_190] : memref<104x2xf32, #tpu.memory_space<vmem>>, vector<8x1xf32>
    %c64_191 = arith.constant 64 : index
    %c1_192 = arith.constant 1 : index
    %348 = vector.load %arg3[%c64_191, %c1_192] : memref<104x2xf32, #tpu.memory_space<vmem>>, vector<8x1xf32>
    %c64_193 = arith.constant 64 : index
    %c1_194 = arith.constant 1 : index
    %349 = vector.load %arg4[%c64_193, %c1_194] : memref<104x2xf32, #tpu.memory_space<vmem>>, vector<8x1xf32>
    %350 = vector.broadcast %346 : vector<1x128xf32> to vector<8x128xf32>
    %351 = vector.broadcast %347 : vector<8x1xf32> to vector<8x128xf32>
    %352 = arith.mulf %350, %351 : vector<8x128xf32>
    %353 = vector.broadcast %348 : vector<8x1xf32> to vector<8x128xf32>
    %354 = arith.addf %352, %353 : vector<8x128xf32>
    %355 = arith.mulf %354, %354 : vector<8x128xf32>
    %cst_195 = arith.constant 1.000000e+00 : f32
    %356 = vector.broadcast %cst_195 : f32 to vector<8x128xf32>
    %357 = arith.addf %356, %355 : vector<8x128xf32>
    %358 = tpu.reciprocal %357 {approx = true} : vector<8x128xf32> -> vector<8x128xf32>
    %359 = vector.broadcast %349 : vector<8x1xf32> to vector<8x128xf32>
    %360 = arith.mulf %358, %359 : vector<8x128xf32>
    %361 = arith.addf %345, %360 : vector<8x128xf32>
    %362 = vector.broadcast %329 : vector<8x1xf32> to vector<8x128xf32>
    %363 = arith.addf %361, %362 : vector<8x128xf32>
    %cst_196 = arith.constant 5.000000e-02 : f32
    %364 = vector.broadcast %cst_196 : f32 to vector<8x128xf32>
    %365 = arith.mulf %364, %363 : vector<8x128xf32>
    %366 = arith.maximumf %363, %365 : vector<8x128xf32>
    %367 = vector.broadcast %330 : vector<8x1xf32> to vector<8x128xf32>
    %368 = arith.mulf %366, %367 : vector<8x128xf32>
    %369 = arith.addf %328, %368 : vector<8x128xf32>
    %c72 = arith.constant 72 : index
    %c0_197 = arith.constant 0 : index
    %370 = vector.load %arg5[%c72, %c0_197] : memref<104x1xf32, #tpu.memory_space<vmem>>, vector<8x1xf32>
    %c72_198 = arith.constant 72 : index
    %c0_199 = arith.constant 0 : index
    %371 = vector.load %arg6[%c72_198, %c0_199] : memref<104x1xf32, #tpu.memory_space<vmem>>, vector<8x1xf32>
    %c0_200 = arith.constant 0 : index
    %c0_201 = arith.constant 0 : index
    %372 = vector.load %arg1[%c0_200, %c0_201] : memref<2x128xf32, #tpu.memory_space<vmem>>, vector<1x128xf32>
    %c72_202 = arith.constant 72 : index
    %c0_203 = arith.constant 0 : index
    %373 = vector.load %arg2[%c72_202, %c0_203] : memref<104x2xf32, #tpu.memory_space<vmem>>, vector<8x1xf32>
    %c72_204 = arith.constant 72 : index
    %c0_205 = arith.constant 0 : index
    %374 = vector.load %arg3[%c72_204, %c0_205] : memref<104x2xf32, #tpu.memory_space<vmem>>, vector<8x1xf32>
    %c72_206 = arith.constant 72 : index
    %c0_207 = arith.constant 0 : index
    %375 = vector.load %arg4[%c72_206, %c0_207] : memref<104x2xf32, #tpu.memory_space<vmem>>, vector<8x1xf32>
    %376 = vector.broadcast %372 : vector<1x128xf32> to vector<8x128xf32>
    %377 = vector.broadcast %373 : vector<8x1xf32> to vector<8x128xf32>
    %378 = arith.mulf %376, %377 : vector<8x128xf32>
    %379 = vector.broadcast %374 : vector<8x1xf32> to vector<8x128xf32>
    %380 = arith.addf %378, %379 : vector<8x128xf32>
    %381 = arith.mulf %380, %380 : vector<8x128xf32>
    %cst_208 = arith.constant 1.000000e+00 : f32
    %382 = vector.broadcast %cst_208 : f32 to vector<8x128xf32>
    %383 = arith.addf %382, %381 : vector<8x128xf32>
    %384 = tpu.reciprocal %383 {approx = true} : vector<8x128xf32> -> vector<8x128xf32>
    %385 = vector.broadcast %375 : vector<8x1xf32> to vector<8x128xf32>
    %386 = arith.mulf %384, %385 : vector<8x128xf32>
    %c1_209 = arith.constant 1 : index
    %c0_210 = arith.constant 0 : index
    %387 = vector.load %arg1[%c1_209, %c0_210] : memref<2x128xf32, #tpu.memory_space<vmem>>, vector<1x128xf32>
    %c72_211 = arith.constant 72 : index
    %c1_212 = arith.constant 1 : index
    %388 = vector.load %arg2[%c72_211, %c1_212] : memref<104x2xf32, #tpu.memory_space<vmem>>, vector<8x1xf32>
    %c72_213 = arith.constant 72 : index
    %c1_214 = arith.constant 1 : index
    %389 = vector.load %arg3[%c72_213, %c1_214] : memref<104x2xf32, #tpu.memory_space<vmem>>, vector<8x1xf32>
    %c72_215 = arith.constant 72 : index
    %c1_216 = arith.constant 1 : index
    %390 = vector.load %arg4[%c72_215, %c1_216] : memref<104x2xf32, #tpu.memory_space<vmem>>, vector<8x1xf32>
    %391 = vector.broadcast %387 : vector<1x128xf32> to vector<8x128xf32>
    %392 = vector.broadcast %388 : vector<8x1xf32> to vector<8x128xf32>
    %393 = arith.mulf %391, %392 : vector<8x128xf32>
    %394 = vector.broadcast %389 : vector<8x1xf32> to vector<8x128xf32>
    %395 = arith.addf %393, %394 : vector<8x128xf32>
    %396 = arith.mulf %395, %395 : vector<8x128xf32>
    %cst_217 = arith.constant 1.000000e+00 : f32
    %397 = vector.broadcast %cst_217 : f32 to vector<8x128xf32>
    %398 = arith.addf %397, %396 : vector<8x128xf32>
    %399 = tpu.reciprocal %398 {approx = true} : vector<8x128xf32> -> vector<8x128xf32>
    %400 = vector.broadcast %390 : vector<8x1xf32> to vector<8x128xf32>
    %401 = arith.mulf %399, %400 : vector<8x128xf32>
    %402 = arith.addf %386, %401 : vector<8x128xf32>
    %403 = vector.broadcast %370 : vector<8x1xf32> to vector<8x128xf32>
    %404 = arith.addf %402, %403 : vector<8x128xf32>
    %cst_218 = arith.constant 5.000000e-02 : f32
    %405 = vector.broadcast %cst_218 : f32 to vector<8x128xf32>
    %406 = arith.mulf %405, %404 : vector<8x128xf32>
    %407 = arith.maximumf %404, %406 : vector<8x128xf32>
    %408 = vector.broadcast %371 : vector<8x1xf32> to vector<8x128xf32>
    %409 = arith.mulf %407, %408 : vector<8x128xf32>
    %410 = arith.addf %369, %409 : vector<8x128xf32>
    %c80 = arith.constant 80 : index
    %c0_219 = arith.constant 0 : index
    %411 = vector.load %arg5[%c80, %c0_219] : memref<104x1xf32, #tpu.memory_space<vmem>>, vector<8x1xf32>
    %c80_220 = arith.constant 80 : index
    %c0_221 = arith.constant 0 : index
    %412 = vector.load %arg6[%c80_220, %c0_221] : memref<104x1xf32, #tpu.memory_space<vmem>>, vector<8x1xf32>
    %c0_222 = arith.constant 0 : index
    %c0_223 = arith.constant 0 : index
    %413 = vector.load %arg1[%c0_222, %c0_223] : memref<2x128xf32, #tpu.memory_space<vmem>>, vector<1x128xf32>
    %c80_224 = arith.constant 80 : index
    %c0_225 = arith.constant 0 : index
    %414 = vector.load %arg2[%c80_224, %c0_225] : memref<104x2xf32, #tpu.memory_space<vmem>>, vector<8x1xf32>
    %c80_226 = arith.constant 80 : index
    %c0_227 = arith.constant 0 : index
    %415 = vector.load %arg3[%c80_226, %c0_227] : memref<104x2xf32, #tpu.memory_space<vmem>>, vector<8x1xf32>
    %c80_228 = arith.constant 80 : index
    %c0_229 = arith.constant 0 : index
    %416 = vector.load %arg4[%c80_228, %c0_229] : memref<104x2xf32, #tpu.memory_space<vmem>>, vector<8x1xf32>
    %417 = vector.broadcast %413 : vector<1x128xf32> to vector<8x128xf32>
    %418 = vector.broadcast %414 : vector<8x1xf32> to vector<8x128xf32>
    %419 = arith.mulf %417, %418 : vector<8x128xf32>
    %420 = vector.broadcast %415 : vector<8x1xf32> to vector<8x128xf32>
    %421 = arith.addf %419, %420 : vector<8x128xf32>
    %422 = arith.mulf %421, %421 : vector<8x128xf32>
    %cst_230 = arith.constant 1.000000e+00 : f32
    %423 = vector.broadcast %cst_230 : f32 to vector<8x128xf32>
    %424 = arith.addf %423, %422 : vector<8x128xf32>
    %425 = tpu.reciprocal %424 {approx = true} : vector<8x128xf32> -> vector<8x128xf32>
    %426 = vector.broadcast %416 : vector<8x1xf32> to vector<8x128xf32>
    %427 = arith.mulf %425, %426 : vector<8x128xf32>
    %c1_231 = arith.constant 1 : index
    %c0_232 = arith.constant 0 : index
    %428 = vector.load %arg1[%c1_231, %c0_232] : memref<2x128xf32, #tpu.memory_space<vmem>>, vector<1x128xf32>
    %c80_233 = arith.constant 80 : index
    %c1_234 = arith.constant 1 : index
    %429 = vector.load %arg2[%c80_233, %c1_234] : memref<104x2xf32, #tpu.memory_space<vmem>>, vector<8x1xf32>
    %c80_235 = arith.constant 80 : index
    %c1_236 = arith.constant 1 : index
    %430 = vector.load %arg3[%c80_235, %c1_236] : memref<104x2xf32, #tpu.memory_space<vmem>>, vector<8x1xf32>
    %c80_237 = arith.constant 80 : index
    %c1_238 = arith.constant 1 : index
    %431 = vector.load %arg4[%c80_237, %c1_238] : memref<104x2xf32, #tpu.memory_space<vmem>>, vector<8x1xf32>
    %432 = vector.broadcast %428 : vector<1x128xf32> to vector<8x128xf32>
    %433 = vector.broadcast %429 : vector<8x1xf32> to vector<8x128xf32>
    %434 = arith.mulf %432, %433 : vector<8x128xf32>
    %435 = vector.broadcast %430 : vector<8x1xf32> to vector<8x128xf32>
    %436 = arith.addf %434, %435 : vector<8x128xf32>
    %437 = arith.mulf %436, %436 : vector<8x128xf32>
    %cst_239 = arith.constant 1.000000e+00 : f32
    %438 = vector.broadcast %cst_239 : f32 to vector<8x128xf32>
    %439 = arith.addf %438, %437 : vector<8x128xf32>
    %440 = tpu.reciprocal %439 {approx = true} : vector<8x128xf32> -> vector<8x128xf32>
    %441 = vector.broadcast %431 : vector<8x1xf32> to vector<8x128xf32>
    %442 = arith.mulf %440, %441 : vector<8x128xf32>
    %443 = arith.addf %427, %442 : vector<8x128xf32>
    %444 = vector.broadcast %411 : vector<8x1xf32> to vector<8x128xf32>
    %445 = arith.addf %443, %444 : vector<8x128xf32>
    %cst_240 = arith.constant 5.000000e-02 : f32
    %446 = vector.broadcast %cst_240 : f32 to vector<8x128xf32>
    %447 = arith.mulf %446, %445 : vector<8x128xf32>
    %448 = arith.maximumf %445, %447 : vector<8x128xf32>
    %449 = vector.broadcast %412 : vector<8x1xf32> to vector<8x128xf32>
    %450 = arith.mulf %448, %449 : vector<8x128xf32>
    %451 = arith.addf %410, %450 : vector<8x128xf32>
    %c88 = arith.constant 88 : index
    %c0_241 = arith.constant 0 : index
    %452 = vector.load %arg5[%c88, %c0_241] : memref<104x1xf32, #tpu.memory_space<vmem>>, vector<8x1xf32>
    %c88_242 = arith.constant 88 : index
    %c0_243 = arith.constant 0 : index
    %453 = vector.load %arg6[%c88_242, %c0_243] : memref<104x1xf32, #tpu.memory_space<vmem>>, vector<8x1xf32>
    %c0_244 = arith.constant 0 : index
    %c0_245 = arith.constant 0 : index
    %454 = vector.load %arg1[%c0_244, %c0_245] : memref<2x128xf32, #tpu.memory_space<vmem>>, vector<1x128xf32>
    %c88_246 = arith.constant 88 : index
    %c0_247 = arith.constant 0 : index
    %455 = vector.load %arg2[%c88_246, %c0_247] : memref<104x2xf32, #tpu.memory_space<vmem>>, vector<8x1xf32>
    %c88_248 = arith.constant 88 : index
    %c0_249 = arith.constant 0 : index
    %456 = vector.load %arg3[%c88_248, %c0_249] : memref<104x2xf32, #tpu.memory_space<vmem>>, vector<8x1xf32>
    %c88_250 = arith.constant 88 : index
    %c0_251 = arith.constant 0 : index
    %457 = vector.load %arg4[%c88_250, %c0_251] : memref<104x2xf32, #tpu.memory_space<vmem>>, vector<8x1xf32>
    %458 = vector.broadcast %454 : vector<1x128xf32> to vector<8x128xf32>
    %459 = vector.broadcast %455 : vector<8x1xf32> to vector<8x128xf32>
    %460 = arith.mulf %458, %459 : vector<8x128xf32>
    %461 = vector.broadcast %456 : vector<8x1xf32> to vector<8x128xf32>
    %462 = arith.addf %460, %461 : vector<8x128xf32>
    %463 = arith.mulf %462, %462 : vector<8x128xf32>
    %cst_252 = arith.constant 1.000000e+00 : f32
    %464 = vector.broadcast %cst_252 : f32 to vector<8x128xf32>
    %465 = arith.addf %464, %463 : vector<8x128xf32>
    %466 = tpu.reciprocal %465 {approx = true} : vector<8x128xf32> -> vector<8x128xf32>
    %467 = vector.broadcast %457 : vector<8x1xf32> to vector<8x128xf32>
    %468 = arith.mulf %466, %467 : vector<8x128xf32>
    %c1_253 = arith.constant 1 : index
    %c0_254 = arith.constant 0 : index
    %469 = vector.load %arg1[%c1_253, %c0_254] : memref<2x128xf32, #tpu.memory_space<vmem>>, vector<1x128xf32>
    %c88_255 = arith.constant 88 : index
    %c1_256 = arith.constant 1 : index
    %470 = vector.load %arg2[%c88_255, %c1_256] : memref<104x2xf32, #tpu.memory_space<vmem>>, vector<8x1xf32>
    %c88_257 = arith.constant 88 : index
    %c1_258 = arith.constant 1 : index
    %471 = vector.load %arg3[%c88_257, %c1_258] : memref<104x2xf32, #tpu.memory_space<vmem>>, vector<8x1xf32>
    %c88_259 = arith.constant 88 : index
    %c1_260 = arith.constant 1 : index
    %472 = vector.load %arg4[%c88_259, %c1_260] : memref<104x2xf32, #tpu.memory_space<vmem>>, vector<8x1xf32>
    %473 = vector.broadcast %469 : vector<1x128xf32> to vector<8x128xf32>
    %474 = vector.broadcast %470 : vector<8x1xf32> to vector<8x128xf32>
    %475 = arith.mulf %473, %474 : vector<8x128xf32>
    %476 = vector.broadcast %471 : vector<8x1xf32> to vector<8x128xf32>
    %477 = arith.addf %475, %476 : vector<8x128xf32>
    %478 = arith.mulf %477, %477 : vector<8x128xf32>
    %cst_261 = arith.constant 1.000000e+00 : f32
    %479 = vector.broadcast %cst_261 : f32 to vector<8x128xf32>
    %480 = arith.addf %479, %478 : vector<8x128xf32>
    %481 = tpu.reciprocal %480 {approx = true} : vector<8x128xf32> -> vector<8x128xf32>
    %482 = vector.broadcast %472 : vector<8x1xf32> to vector<8x128xf32>
    %483 = arith.mulf %481, %482 : vector<8x128xf32>
    %484 = arith.addf %468, %483 : vector<8x128xf32>
    %485 = vector.broadcast %452 : vector<8x1xf32> to vector<8x128xf32>
    %486 = arith.addf %484, %485 : vector<8x128xf32>
    %cst_262 = arith.constant 5.000000e-02 : f32
    %487 = vector.broadcast %cst_262 : f32 to vector<8x128xf32>
    %488 = arith.mulf %487, %486 : vector<8x128xf32>
    %489 = arith.maximumf %486, %488 : vector<8x128xf32>
    %490 = vector.broadcast %453 : vector<8x1xf32> to vector<8x128xf32>
    %491 = arith.mulf %489, %490 : vector<8x128xf32>
    %492 = arith.addf %451, %491 : vector<8x128xf32>
    %c96 = arith.constant 96 : index
    %c0_263 = arith.constant 0 : index
    %493 = vector.load %arg5[%c96, %c0_263] : memref<104x1xf32, #tpu.memory_space<vmem>>, vector<8x1xf32>
    %c96_264 = arith.constant 96 : index
    %c0_265 = arith.constant 0 : index
    %494 = vector.load %arg6[%c96_264, %c0_265] : memref<104x1xf32, #tpu.memory_space<vmem>>, vector<8x1xf32>
    %c0_266 = arith.constant 0 : index
    %c0_267 = arith.constant 0 : index
    %495 = vector.load %arg1[%c0_266, %c0_267] : memref<2x128xf32, #tpu.memory_space<vmem>>, vector<1x128xf32>
    %c96_268 = arith.constant 96 : index
    %c0_269 = arith.constant 0 : index
    %496 = vector.load %arg2[%c96_268, %c0_269] : memref<104x2xf32, #tpu.memory_space<vmem>>, vector<8x1xf32>
    %c96_270 = arith.constant 96 : index
    %c0_271 = arith.constant 0 : index
    %497 = vector.load %arg3[%c96_270, %c0_271] : memref<104x2xf32, #tpu.memory_space<vmem>>, vector<8x1xf32>
    %c96_272 = arith.constant 96 : index
    %c0_273 = arith.constant 0 : index
    %498 = vector.load %arg4[%c96_272, %c0_273] : memref<104x2xf32, #tpu.memory_space<vmem>>, vector<8x1xf32>
    %499 = vector.broadcast %495 : vector<1x128xf32> to vector<8x128xf32>
    %500 = vector.broadcast %496 : vector<8x1xf32> to vector<8x128xf32>
    %501 = arith.mulf %499, %500 : vector<8x128xf32>
    %502 = vector.broadcast %497 : vector<8x1xf32> to vector<8x128xf32>
    %503 = arith.addf %501, %502 : vector<8x128xf32>
    %504 = arith.mulf %503, %503 : vector<8x128xf32>
    %cst_274 = arith.constant 1.000000e+00 : f32
    %505 = vector.broadcast %cst_274 : f32 to vector<8x128xf32>
    %506 = arith.addf %505, %504 : vector<8x128xf32>
    %507 = tpu.reciprocal %506 {approx = true} : vector<8x128xf32> -> vector<8x128xf32>
    %508 = vector.broadcast %498 : vector<8x1xf32> to vector<8x128xf32>
    %509 = arith.mulf %507, %508 : vector<8x128xf32>
    %c1_275 = arith.constant 1 : index
    %c0_276 = arith.constant 0 : index
    %510 = vector.load %arg1[%c1_275, %c0_276] : memref<2x128xf32, #tpu.memory_space<vmem>>, vector<1x128xf32>
    %c96_277 = arith.constant 96 : index
    %c1_278 = arith.constant 1 : index
    %511 = vector.load %arg2[%c96_277, %c1_278] : memref<104x2xf32, #tpu.memory_space<vmem>>, vector<8x1xf32>
    %c96_279 = arith.constant 96 : index
    %c1_280 = arith.constant 1 : index
    %512 = vector.load %arg3[%c96_279, %c1_280] : memref<104x2xf32, #tpu.memory_space<vmem>>, vector<8x1xf32>
    %c96_281 = arith.constant 96 : index
    %c1_282 = arith.constant 1 : index
    %513 = vector.load %arg4[%c96_281, %c1_282] : memref<104x2xf32, #tpu.memory_space<vmem>>, vector<8x1xf32>
    %514 = vector.broadcast %510 : vector<1x128xf32> to vector<8x128xf32>
    %515 = vector.broadcast %511 : vector<8x1xf32> to vector<8x128xf32>
    %516 = arith.mulf %514, %515 : vector<8x128xf32>
    %517 = vector.broadcast %512 : vector<8x1xf32> to vector<8x128xf32>
    %518 = arith.addf %516, %517 : vector<8x128xf32>
    %519 = arith.mulf %518, %518 : vector<8x128xf32>
    %cst_283 = arith.constant 1.000000e+00 : f32
    %520 = vector.broadcast %cst_283 : f32 to vector<8x128xf32>
    %521 = arith.addf %520, %519 : vector<8x128xf32>
    %522 = tpu.reciprocal %521 {approx = true} : vector<8x128xf32> -> vector<8x128xf32>
    %523 = vector.broadcast %513 : vector<8x1xf32> to vector<8x128xf32>
    %524 = arith.mulf %522, %523 : vector<8x128xf32>
    %525 = arith.addf %509, %524 : vector<8x128xf32>
    %526 = vector.broadcast %493 : vector<8x1xf32> to vector<8x128xf32>
    %527 = arith.addf %525, %526 : vector<8x128xf32>
    %cst_284 = arith.constant 5.000000e-02 : f32
    %528 = vector.broadcast %cst_284 : f32 to vector<8x128xf32>
    %529 = arith.mulf %528, %527 : vector<8x128xf32>
    %530 = arith.maximumf %527, %529 : vector<8x128xf32>
    %531 = vector.broadcast %494 : vector<8x1xf32> to vector<8x128xf32>
    %532 = arith.mulf %530, %531 : vector<8x128xf32>
    %533 = arith.addf %492, %532 : vector<8x128xf32>
    %cst_285 = arith.constant dense<0.000000e+00> : vector<128xf32>
    %534 = vector.multi_reduction <add>, %533, %cst_285 [0] : vector<8x128xf32> to vector<128xf32>
    %535 = vector.shape_cast %534 : vector<128xf32> to vector<1x128xf32>
    %c0_286 = arith.constant 0 : index
    %c0_287 = arith.constant 0 : index
    %536 = memref.load %arg7[%c0_286, %c0_287] : memref<1x1xf32, #tpu.memory_space<smem>>
    %537 = vector.broadcast %536 : f32 to vector<1x128xf32>
    %538 = arith.addf %535, %537 : vector<1x128xf32>
    %cst_288 = arith.constant 0.000000e+00 : f32
    %539 = vector.broadcast %cst_288 : f32 to vector<1x128xf32>
    %540 = arith.subf %539, %538 : vector<1x128xf32>
    %541 = math.exp %540 : vector<1x128xf32>
    %cst_289 = arith.constant 1.000000e+00 : f32
    %542 = vector.broadcast %cst_289 : f32 to vector<1x128xf32>
    %543 = arith.addf %542, %541 : vector<1x128xf32>
    %cst_290 = arith.constant 1.000000e+00 : f32
    %544 = vector.broadcast %cst_290 : f32 to vector<1x128xf32>
    %545 = arith.divf %544, %543 : vector<1x128xf32>
    %c0_291 = arith.constant 0 : index
    %c0_292 = arith.constant 0 : index
    %546 = vector.load %arg8[%c0_291, %c0_292] : memref<1x128xf32, #tpu.memory_space<vmem>>, vector<1x128xf32>
    tpu.vector_store %arg8[%c0_291, %c0_292], %545 {strides = array<i32>} : memref<1x128xf32, #tpu.memory_space<vmem>>, vector<1x128xf32>,
    return
  }
  func.func @transform_0(%arg0: i32) -> (i32, i32) {
    %c0_i32 = arith.constant 0 : i32
    %c0_i32_0 = arith.constant 0 : i32
    return %c0_i32, %arg0 : i32, i32
  }
  func.func @transform_1(%arg0: i32) -> (i32, i32) {
    %c0_i32 = arith.constant 0 : i32
    %c0_i32_0 = arith.constant 0 : i32
    %c0_i32_1 = arith.constant 0 : i32
    return %c0_i32, %c0_i32_0 : i32, i32
  }
  func.func @transform_2(%arg0: i32) -> (i32, i32) {
    %c0_i32 = arith.constant 0 : i32
    %c0_i32_0 = arith.constant 0 : i32
    %c0_i32_1 = arith.constant 0 : i32
    return %c0_i32, %c0_i32_0 : i32, i32
  }
  func.func @transform_3(%arg0: i32) -> (i32, i32) {
    %c0_i32 = arith.constant 0 : i32
    %c0_i32_0 = arith.constant 0 : i32
    %c0_i32_1 = arith.constant 0 : i32
    return %c0_i32, %c0_i32_0 : i32, i32
  }
  func.func @transform_4(%arg0: i32) -> (i32, i32) {
    %c0_i32 = arith.constant 0 : i32
    %c0_i32_0 = arith.constant 0 : i32
    %c0_i32_1 = arith.constant 0 : i32
    return %c0_i32, %c0_i32_0 : i32, i32
  }
  func.func @transform_5(%arg0: i32) -> (i32, i32) {
    %c0_i32 = arith.constant 0 : i32
    %c0_i32_0 = arith.constant 0 : i32
    %c0_i32_1 = arith.constant 0 : i32
    return %c0_i32, %c0_i32_0 : i32, i32
  }
  func.func @transform_6(%arg0: i32) -> (i32, i32) {
    %c0_i32 = arith.constant 0 : i32
    %c0_i32_0 = arith.constant 0 : i32
    %c0_i32_1 = arith.constant 0 : i32
    return %c0_i32, %c0_i32_0 : i32, i32
  }
  func.func @transform_7(%arg0: i32) -> (i32, i32) {
    %c0_i32 = arith.constant 0 : i32
    %c0_i32_0 = arith.constant 0 : i32
    return %c0_i32, %arg0 : i32, i32
  }
}

</mosaic_0001>

<bundles_post_ra>
// kernel: tpu_custom_call.1
= control target key start
LH: loop header
LB: loop body
LE: loop exit
PB: predicated region body
PF: predicated region fallthrough
CT: control target
= control target key end

     0   :  { %v995_v3 = vmov 1   ;;  %v996_v4 = vmov 0   ;;  %s1434_s0 = inlined_call_operand.vmem [shape: f32[2,128], index: 0, kind: input, shape index: {}]   ;;  %s1435_s1 = inlined_call_operand.vmem [shape: f32[104,2], index: 1, kind: input, shape index: {}]   ;;  %s1436_s2 = inlined_call_operand.vmem [shape: f32[104,2], index: 2, kind: input, shape index: {}]   ;;  %s1437_s3 = inlined_call_operand.vmem [shape: f32[104,2], index: 3, kind: input, shape index: {}]   ;;  %s1438_s4 = inlined_call_operand.vmem [shape: f32[104,1], index: 4, kind: input, shape index: {}]   ;;  %s1439_s5 = inlined_call_operand.vmem [shape: f32[104,1], index: 5, kind: input, shape index: {}]   ;;  %s1440_s6 = inlined_call_operand.<no memory space> [shape: f32[1,1], index: 6, kind: input, shape index: {}]   ;;  %s1441_s7 = inlined_call_operand.hbm [shape: f32[1,128], index: 7, kind: output, shape index: {}]  }
   0x1   :  { %v1041_v0 = vld [vmem:[%s1436_s2 + $0x8] sm:$0xff]  ;;  %v33_v1 = vld [vmem:[%s1437_s3] sm:$0xff]  ;;  %866 = vset.pattern.permute.xlu0 %v995_v3  ;;  %862 = vset.pattern.permute.xlu2 %v995_v3 }
   0x2   :  { %v32_v2 = vld [vmem:[%s1436_s2] sm:$0xff]  ;;  %860 = vset.pattern.permute.xlu1 %v996_v4  ;;  %124 = vperm.xlu0 %866, %v1041_v0  }
   0x3   :  { %52 = vperm.xlu1 %860, %v33_v1   ;;  %64 = vperm.xlu2 %862, %v32_v2  }
   0x4   :  { %13 = vsyncpa [#allocation4], 0  ;;  %v1056_v5 = vld [vmem:[%s1436_s2 + $0x18] sm:$0xff]  ;;  %v31_v6 = vld [vmem:[%s1435_s1] sm:$0xff]  ;;  %s997_s15 = smov [#allocation3]  }
   0x5   :  { %v1066_v7 = vld [vmem:[%s1436_s2 + $0x28] sm:$0xff]  ;;  %v29_v9 = vld [vmem:[%s1439_s5] sm:$0xff]  ;;  %v1080_v10 = vld [vmem:[%s1436_s2 + $0x38] sm:$0xff] }
   0x6   :  { %v94_v8 = vld [vmem:[%s1435_s1 + $0x8] sm:$0xff]  ;;  %v1101_v14 = vld [vmem:[%s1435_s1 + $0x58] sm:$0xff]  ;;  %v154_v15 = vld [vmem:[%s1435_s1 + $0x10] sm:$0xff] }
   0x7   :  { %v96_v11 = vld [vmem:[%s1437_s3 + $0x8] sm:$0xff]  ;;  %v156_v17 = vld [vmem:[%s1437_s3 + $0x10] sm:$0xff]  ;;  %v28_v19 = vld [vmem:[%s1438_s4] sm:$0xff] }
   0x8   :  { %v1090_v12 = vld [vmem:[%s1436_s2 + $0x48] sm:$0xff]  ;;  %v155_v18 = vld [vmem:[%s1436_s2 + $0x10] sm:$0xff]  ;;  %v214_v20 = vld [vmem:[%s1435_s1 + $0x18] sm:$0xff] }
   0x9   :  { %v92_v13 = vld [vmem:[%s1438_s4 + $0x8] sm:$0xff]  ;;  %v153_v21 = vld [vmem:[%s1439_s5 + $0x10] sm:$0xff]  ;;  %v216_v22 = vld [vmem:[%s1437_s3 + $0x18] sm:$0xff] }
   0xa   :  { %244 = vperm.xlu0 %866, %v1056_v5   ;;  %v93_v16 = vld [vmem:[%s1439_s5 + $0x8] sm:$0xff]  ;;  %v212_v23 = vld [vmem:[%s1438_s4 + $0x18] sm:$0xff]  ;;  %v152_v24 = vld [vmem:[%s1438_s4 + $0x10] sm:$0xff] }
   0xb   :  { %861 = vset.pattern.permute.xlu1 %v995_v3  ;;  %72 = vperm.xlu2 %862, %v33_v1   ;;  %v274_v26 = vld [vmem:[%s1435_s1 + $0x20] sm:$0xff]  ;;  %v213_v27 = vld [vmem:[%s1439_s5 + $0x18] sm:$0xff]  ;;  %v334_v38 = vld [vmem:[%s1435_s1 + $0x28] sm:$0xff] }
   0xc   :  { %59 = vperm.xlu1 %861, %v31_v6   ;;  %v276_v29 = vld [vmem:[%s1437_s3 + $0x20] sm:$0xff]  ;;  %v395_v46 = vld [vmem:[%s1436_s2 + $0x30] sm:$0xff]  ;;  %v336_v48 = vld [vmem:[%s1437_s3 + $0x28] sm:$0xff] }
   0xd   :  { %v275_v30 = vld [vmem:[%s1436_s2 + $0x20] sm:$0xff]  ;;  %v392_v54 = vld [vmem:[%s1438_s4 + $0x30] sm:$0xff]  ;;  %v332_v55 = vld [vmem:[%s1438_s4 + $0x28] sm:$0xff] }
   0xe   :  { %v272_v32 = vld [vmem:[%s1438_s4 + $0x20] sm:$0xff]  ;;  %v394_v62 = vld [vmem:[%s1435_s1 + $0x30] sm:$0xff] }
   0xf   :  { %v1170_v35 = vld [vmem:[%s1434_s0 + $0x1] ss:$0 sm:$0xff] }
  0x10   :  { %v273_v39 = vld [vmem:[%s1439_s5 + $0x20] sm:$0xff] }
  0x12   :  { %364 = vperm.xlu0 %866, %v1066_v7  }
  0x13   :  { %864 = vset.pattern.permute.xlu2 %v996_v4 }
  0x14   :  { %99 = vperm.xlu2 %864, %v94_v8   ;;  %863 = vset.pattern.permute.xlu1 %v996_v4 }
  0x15   :  { %87 = vperm.xlu1 %863, %v29_v9   ;;  %v396_v9 = vld [vmem:[%s1437_s3 + $0x30] sm:$0xff] }
  0x1a   :  { %484 = vperm.xlu0 %866, %v1080_v10  }
  0x1c   :  { %865 = vset.pattern.permute.xlu2 %v995_v3 }
  0x1d   :  { %119 = vperm.xlu2 %865, %v94_v8   ;;  %114 = vperm.xlu1 %863, %v96_v11  }
  0x22   :  { %604 = vperm.xlu0 %866, %v1090_v12  }
  0x25   :  { %868 = vset.pattern.permute.xlu2 %v996_v4  ;;  %867 = vset.pattern.permute.xlu1 %v995_v3 }
  0x26   :  { %139 = vperm.xlu2 %868, %v92_v13   ;;  %132 = vperm.xlu1 %867, %v96_v11   ;;  %v512_v11 = vld [vmem:[%s1438_s4 + $0x40] sm:$0xff] }
  0x2a   :  { %719 = vperm.xlu0 %866, %v1101_v14  }
  0x2e   :  { %159 = vperm.xlu2 %868, %v154_v15   ;;  %869 = vset.pattern.permute.xlu1 %v996_v4 }
  0x2f   :  { %147 = vperm.xlu1 %869, %v93_v16   ;;  %v1250_v16 = vld [vmem:[%s1434_s0] ss:$0 sm:$0xff]  ;;  %s846_s0 = sshll.u32 %s997_s15, 4  ;;  %s847_s0 = int_to_ptr.vmem [resolvable:$true] %s846_s0 }
  0x32   :  { %905 = vset.pattern.permute.xlu0 %v996_v4 }
  0x33   :  { %37 = vperm.xlu0 %905, %v31_v6  }
  0x36   :  { %870 = vset.pattern.permute.xlu2 %v995_v3 }
  0x37   :  { %179 = vperm.xlu2 %870, %v154_v15   ;;  %174 = vperm.xlu1 %869, %v156_v17  }
  0x3b   :  { %43 = vperm.xlu0 %905, %v32_v2  }
  0x3f   :  { %192 = vperm.xlu2 %870, %v156_v17   ;;  %871 = vset.pattern.permute.xlu1 %v995_v3 }
  0x40   :  { %184 = vperm.xlu1 %871, %v155_v18  }
  0x43   :  { %79 = vperm.xlu0 %905, %v28_v19  }
  0x47   :  { %873 = vset.pattern.permute.xlu2 %v996_v4 }
  0x48   :  { %219 = vperm.xlu2 %873, %v214_v20   ;;  %872 = vset.pattern.permute.xlu1 %v996_v4 }
  0x49   :  { %207 = vperm.xlu1 %872, %v153_v21  }
  0x4b   :  { %105 = vperm.xlu0 %905, %v1041_v0   ;;  %v333_v0 = vld [vmem:[%s1439_s5 + $0x28] sm:$0xff] }
  0x50   :  { %874 = vset.pattern.permute.xlu2 %v995_v3 }
  0x51   :  { %239 = vperm.xlu2 %874, %v214_v20   ;;  %234 = vperm.xlu1 %872, %v216_v22  }
  0x53   :  { %165 = vperm.xlu0 %905, %v155_v18  }
  0x59   :  { %876 = vset.pattern.permute.xlu2 %v996_v4  ;;  %875 = vset.pattern.permute.xlu1 %v995_v3 }
  0x5a   :  { %259 = vperm.xlu2 %876, %v212_v23   ;;  %252 = vperm.xlu1 %875, %v216_v22   ;;  %v454_v22 = vld [vmem:[%s1435_s1 + $0x38] sm:$0xff] }
  0x5b   :  { %199 = vperm.xlu0 %905, %v152_v24  }
  0x5d   :  { %v65_v25 = vpop.permute.xlu2 %64 }
  0x62   :  { %279 = vperm.xlu2 %876, %v274_v26   ;;  %877 = vset.pattern.permute.xlu1 %v996_v4 }
  0x63   :  { %267 = vperm.xlu1 %877, %v213_v27   ;;  %225 = vperm.xlu0 %905, %v1056_v5  }
  0x65   :  { %v73_v28 = vpop.permute.xlu2 %72 }
  0x6a   :  { %878 = vset.pattern.permute.xlu2 %v995_v3 }
  0x6b   :  { %299 = vperm.xlu2 %878, %v274_v26   ;;  %294 = vperm.xlu1 %877, %v276_v29  }
  0x6c   :  { %285 = vperm.xlu0 %905, %v275_v30  }
  0x6e   :  { %v1159_v31 = vpop.permute.xlu2 %99 }
  0x73   :  { %312 = vperm.xlu2 %878, %v276_v29   ;;  %879 = vset.pattern.permute.xlu1 %v995_v3  ;;  %v1271_v29 = vld [vmem:[%s1436_s2 + $0x50] sm:$0xff] }
  0x74   :  { %304 = vperm.xlu1 %879, %v275_v30   ;;  %319 = vperm.xlu0 %905, %v272_v32   ;;  %v125_v33 = vpop.permute.xlu0 %124 }
  0x75   :  { %v1165_v34 = vpop.permute.xlu1 %52 }
  0x77   :  { %v120_v36 = vpop.permute.xlu2 %119 }
  0x78   :  { %v122_v37 = vmul.f32 %v1170_v35, %v120_v36 }
  0x7a   :  { %v127_v40 = vadd.f32 %v125_v33, %v122_v37 }
  0x7b   :  { %881 = vset.pattern.permute.xlu2 %v996_v4 }
  0x7c   :  { %339 = vperm.xlu2 %881, %v334_v38   ;;  %880 = vset.pattern.permute.xlu1 %v996_v4  ;;  %v1181_v41 = vpop.permute.xlu0 %244  ;;  %v128_v52 = vmul.f32 %v127_v40, %v127_v40  ;;  %v1283_v40 = vld [vmem:[%s1436_s2 + $0x60] sm:$0xff] }
  0x7d   :  { %345 = vperm.xlu0 %905, %v1066_v7   ;;  %327 = vperm.xlu1 %880, %v273_v39   ;;  %v1231_v7 = vld [vmem:[%s1436_s2 + $0x40] sm:$0xff] }
  0x7e   :  { %v60_v42 = vpop.permute.xlu1 %59  ;;  %v129_v56 = vadd.f32 1.0, %v128_v52 }
  0x7f   :  { %v62_v43 = vmul.f32 %v1170_v35, %v60_v42 }
  0x80   :  { %v1185_v44 = vpop.permute.xlu2 %139 }
  0x81   :  { %v67_v45 = vadd.f32 %v65_v25, %v62_v43  ;;  %v393_v25 = vld [vmem:[%s1439_s5 + $0x30] sm:$0xff] }
  0x83   :  { %v68_v47 = vmul.f32 %v67_v45, %v67_v45  ;;  %v102_v45 = vmul.f32 %v1250_v16, %v1159_v31 }
  0x84   :  { %882 = vset.pattern.permute.xlu2 %v995_v3  ;;  %v1194_v49 = vpop.permute.xlu0 %364 }
  0x85   :  { %v69_v50 = vadd.f32 1.0, %v68_v47  ;;  %405 = vperm.xlu0 %905, %v395_v46   ;;  %359 = vperm.xlu2 %882, %v334_v38   ;;  %v456_v38 = vld [vmem:[%s1437_s3 + $0x38] sm:$0xff] }
  0x86   :  { %354 = vperm.xlu1 %880, %v336_v48  }
  0x87   :  { %913 = vrcp.f32 %v69_v50  ;;  %v1196_v51 = vpop.permute.xlu1 %87 }
  0x88   :  { %v1198_v53 = vpop.permute.xlu2 %159  ;;  %915 = vrcp.f32 %v129_v56 }
  0x8c   :  { %v1206_v57 = vpop.permute.xlu0 %484 }
  0x8d   :  { %v914_v58 = vpop.eup %913  ;;  %439 = vperm.xlu0 %905, %v392_v54   ;;  %884 = vset.pattern.permute.xlu2 %v996_v4 }
  0x8e   :  { %883 = vset.pattern.permute.xlu1 %v995_v3  ;;  %379 = vperm.xlu2 %884, %v332_v55   ;;  %v1210_v59 = vmul.f32 %v914_v58, %v73_v28  ;;  %v916_v1 = vpop.eup %915 }
  0x8f   :  { %372 = vperm.xlu1 %883, %v336_v48   ;;  %v1212_v60 = vpop.permute.xlu1 %114 }
  0x91   :  { %v180_v61 = vpop.permute.xlu2 %179 }
  0x92   :  { %v182_v27 = vmul.f32 %v1170_v35, %v180_v61 }
  0x94   :  { %v1217_v63 = vpop.permute.xlu0 %604 }
  0x95   :  { %465 = vperm.xlu0 %905, %v1080_v10  }
  0x96   :  { %399 = vperm.xlu2 %884, %v394_v62  }
  0x97   :  { %885 = vset.pattern.permute.xlu1 %v996_v4 }
  0x98   :  { %387 = vperm.xlu1 %885, %v333_v0   ;;  %v133_v2 = vpop.permute.xlu1 %132 }
  0x99   :  { %v1224_v5 = vmul.f32 %v916_v1, %v133_v2  ;;  %v1226_v6 = vpop.permute.xlu2 %192  ;;  %v162_v1 = vmul.f32 %v1250_v16, %v1198_v53 }
  0x9c   :  { %v1233_v8 = vpop.permute.xlu0 %719 }
  0x9d   :  { %525 = vperm.xlu0 %905, %v1231_v7  }
  0x9e   :  { %886 = vset.pattern.permute.xlu2 %v995_v3 }
  0x9f   :  { %419 = vperm.xlu2 %886, %v394_v62  }
  0xa0   :  { %414 = vperm.xlu1 %885, %v396_v9  }
  0xa1   :  { %v1240_v10 = vpop.permute.xlu1 %147 }
  0xa2   :  { %v1245_v13 = vpop.permute.xlu2 %219 }
  0xa5   :  { %559 = vperm.xlu0 %905, %v512_v11   ;;  %v38_v15 = vpop.permute.xlu0 %37 }
  0xa6   :  { %v40_v18 = vmul.f32 %v1250_v16, %v38_v15  ;;  %v514_v15 = vld [vmem:[%s1435_s1 + $0x40] sm:$0xff] }
  0xa7   :  { %432 = vperm.xlu2 %886, %v396_v9  }
  0xa8   :  { %887 = vset.pattern.permute.xlu1 %v995_v3 }
  0xa9   :  { %424 = vperm.xlu1 %887, %v395_v46   ;;  %v1253_v17 = vpop.permute.xlu1 %174 }
  0xab   :  { %v240_v19 = vpop.permute.xlu2 %239 }
  0xac   :  { %v242_v20 = vmul.f32 %v1170_v35, %v240_v19 }
  0xad   :  { %585 = vperm.xlu0 %905, %v1090_v12   ;;  %v44_v21 = vpop.permute.xlu0 %43 }
  0xae   :  { %v46_v23 = vadd.f32 %v44_v21, %v40_v18  ;;  %v247_v24 = vadd.f32 %v1181_v41, %v242_v20  ;;  %v453_v20 = vld [vmem:[%s1439_s5 + $0x38] sm:$0xff] }
  0xaf   :  { %889 = vset.pattern.permute.xlu2 %v996_v4 }
  0xb0   :  { %v47_v26 = vmul.f32 %v46_v23, %v46_v23  ;;  %459 = vperm.xlu2 %889, %v454_v22   ;;  %v248_v41 = vmul.f32 %v247_v24, %v247_v24 }
  0xb1   :  { %888 = vset.pattern.permute.xlu1 %v996_v4 }
  0xb2   :  { %v48_v12 = vadd.f32 1.0, %v47_v26  ;;  %447 = vperm.xlu1 %888, %v393_v25   ;;  %v185_v28 = vpop.permute.xlu1 %184  ;;  %v249_v54 = vadd.f32 1.0, %v248_v41 }
  0xb3   :  { %v187_v30 = vadd.f32 %v185_v28, %v182_v27  ;;  %v516_v28 = vld [vmem:[%s1437_s3 + $0x40] sm:$0xff] }
  0xb4   :  { %917 = vrcp.f32 %v48_v12  ;;  %v1273_v32 = vpop.permute.xlu2 %259 }
  0xb5   :  { %v188_v33 = vmul.f32 %v187_v30, %v187_v30  ;;  %645 = vperm.xlu0 %905, %v1271_v29   ;;  %v80_v36 = vpop.permute.xlu0 %79 }
  0xb7   :  { %v189_v37 = vadd.f32 1.0, %v188_v33  ;;  %v693_v33 = vld [vmem:[%s1439_s5 + $0x58] sm:$0xff] }
  0xb8   :  { %890 = vset.pattern.permute.xlu2 %v995_v3 }
  0xb9   :  { %919 = vrcp.f32 %v189_v37  ;;  %479 = vperm.xlu2 %890, %v454_v22   ;;  %v222_v37 = vmul.f32 %v1250_v16, %v1245_v13 }
  0xba   :  { %v918_v39 = vpop.eup %917  ;;  %474 = vperm.xlu1 %888, %v456_v38   ;;  %921 = vrcp.f32 %v249_v54 }
  0xbb   :  { %v55_v42 = vmul.f32 %v918_v39, %v1165_v34  ;;  %v1286_v43 = vpop.permute.xlu1 %207  ;;  %v452_v34 = vld [vmem:[%s1438_s4 + $0x38] sm:$0xff] }
  0xbc   :  { %v1290_v46 = vpop.permute.xlu2 %279 }
  0xbd   :  { %v76_v47 = vadd.f32 %v1210_v59, %v55_v42  ;;  %765 = vperm.xlu0 %905, %v1283_v40   ;;  %v106_v48 = vpop.permute.xlu0 %105  ;;  %v632_v59 = vld [vmem:[%s1438_s4 + $0x50] sm:$0xff]  ;;  %v282_v13 = vmul.f32 %v1250_v16, %v1290_v46 }
  0xbe   :  { %v108_v50 = vadd.f32 %v106_v48, %v102_v45 }
  0xbf   :  { %v920_v52 = vpop.eup %919  ;;  %v82_v55 = vadd.f32 %v80_v36, %v76_v47 }
  0xc0   :  { %v109_v56 = vmul.f32 %v108_v50, %v108_v50  ;;  %v195_v58 = vmul.f32 %v920_v52, %v1226_v6  ;;  %v922_v19 = vpop.eup %921 }
  0xc1   :  { %v83_v61 = vmul.f32 0.05, %v82_v55  ;;  %892 = vset.pattern.permute.xlu2 %v996_v4 }
  0xc2   :  { %v110_v31 = vadd.f32 1.0, %v109_v56  ;;  %891 = vset.pattern.permute.xlu1 %v995_v3  ;;  %499 = vperm.xlu2 %892, %v452_v34  }
  0xc3   :  { %v84_v62 = vmax.f32 %v82_v55, %v83_v61  ;;  %492 = vperm.xlu1 %891, %v456_v38   ;;  %v1303_v0 = vpop.permute.xlu1 %234 }
  0xc4   :  { %923 = vrcp.f32 %v110_v31 }
  0xc5   :  { %v90_v2 = vmul.f32 %v1196_v51, %v84_v62  ;;  %679 = vperm.xlu0 %905, %v632_v59   ;;  %v166_v6 = vpop.permute.xlu0 %165  ;;  %v1308_v9 = vpop.permute.xlu2 %299  ;;  %v692_v51 = vld [vmem:[%s1438_s4 + $0x58] sm:$0xff]  ;;  %v574_v59 = vld [vmem:[%s1435_s1 + $0x48] sm:$0xff] }
  0xc6   :  { %v168_v11 = vadd.f32 %v166_v6, %v162_v1 }
  0xc8   :  { %v169_v18 = vmul.f32 %v168_v11, %v168_v11 }
  0xca   :  { %v924_v21 = vpop.eup %923  ;;  %v170_v53 = vadd.f32 1.0, %v169_v18  ;;  %519 = vperm.xlu2 %892, %v514_v15  }
  0xcb   :  { %v117_v22 = vmul.f32 %v924_v21, %v1212_v60  ;;  %893 = vset.pattern.permute.xlu1 %v996_v4 }
  0xcc   :  { %925 = vrcp.f32 %v170_v53  ;;  %507 = vperm.xlu1 %893, %v453_v20   ;;  %v253_v23 = vpop.permute.xlu1 %252 }
  0xcd   :  { %v136_v24 = vadd.f32 %v1224_v5, %v117_v22  ;;  %v255_v25 = vmul.f32 %v922_v19, %v253_v23  ;;  %739 = vperm.xlu0 %905, %v692_v51   ;;  %v200_v26 = vpop.permute.xlu0 %199  ;;  %v1322_v27 = vpop.permute.xlu2 %312 }
  0xcf   :  { %v142_v12 = vadd.f32 %v1185_v44, %v136_v24 }
  0xd1   :  { %v143_v30 = vmul.f32 0.05, %v142_v12 }
  0xd2   :  { %v926_v60 = vpop.eup %925  ;;  %894 = vset.pattern.permute.xlu2 %v995_v3 }
  0xd3   :  { %v177_v5 = vmul.f32 %v926_v60, %v1253_v17  ;;  %539 = vperm.xlu2 %894, %v514_v15   ;;  %v144_v36 = vmax.f32 %v142_v12, %v143_v30 }
  0xd4   :  { %534 = vperm.xlu1 %893, %v516_v28  }
  0xd5   :  { %v196_v44 = vadd.f32 %v195_v58, %v177_v5  ;;  %747 = vperm.xlu0 %905, %v693_v33   ;;  %v268_v38 = vpop.permute.xlu1 %267  ;;  %v226_v39 = vpop.permute.xlu0 %225  ;;  %v150_v41 = vmul.f32 %v1240_v10, %v144_v36 }
  0xd6   :  { %v228_v42 = vadd.f32 %v226_v39, %v222_v37  ;;  %v340_v45 = vpop.permute.xlu2 %339  ;;  %v572_v37 = vld [vmem:[%s1438_s4 + $0x48] sm:$0xff] }
  0xd7   :  { %v202_v47 = vadd.f32 %v200_v26, %v196_v44  ;;  %v151_v48 = vadd.f32 %v150_v41, %v90_v2  ;;  %v342_v23 = vmul.f32 %v1250_v16, %v340_v45 }
  0xd8   :  { %v229_v50 = vmul.f32 %v228_v42, %v228_v42 }
  0xd9   :  { %v203_v52 = vmul.f32 0.05, %v202_v47 }
  0xda   :  { %v230_v54 = vadd.f32 1.0, %v229_v50 }
  0xdb   :  { %v204_v17 = vmax.f32 %v202_v47, %v203_v52  ;;  %552 = vperm.xlu2 %894, %v516_v28  }
  0xdc   :  { %927 = vrcp.f32 %v230_v54  ;;  %895 = vset.pattern.permute.xlu1 %v995_v3 }
  0xdd   :  { %v210_v55 = vmul.f32 %v1286_v43, %v204_v17  ;;  %544 = vperm.xlu1 %895, %v1231_v7   ;;  %v295_v10 = vpop.permute.xlu1 %294  ;;  %v513_v7 = vld [vmem:[%s1439_s5 + $0x40] sm:$0xff]  ;;  %v302_v43 = vmul.f32 %v1170_v35, %v1308_v9  ;;  %v576_v9 = vld [vmem:[%s1437_s3 + $0x48] sm:$0xff] }
  0xde   :  { %v286_v34 = vpop.permute.xlu0 %285 }
  0xdf   :  { %v288_v56 = vadd.f32 %v286_v34, %v282_v13  ;;  %v360_v58 = vpop.permute.xlu2 %359  ;;  %v211_v61 = vadd.f32 %v210_v55, %v151_v48  ;;  %v573_v13 = vld [vmem:[%s1439_s5 + $0x48] sm:$0xff] }
  0xe0   :  { %v362_v53 = vmul.f32 %v1170_v35, %v360_v58 }
  0xe1   :  { %v289_v31 = vmul.f32 %v288_v56, %v288_v56 }
  0xe2   :  { %v928_v62 = vpop.eup %927 }
  0xe3   :  { %v237_v1 = vmul.f32 %v928_v62, %v1303_v0  ;;  %v290_v2 = vadd.f32 1.0, %v289_v31  ;;  %897 = vset.pattern.permute.xlu2 %v996_v4 }
  0xe4   :  { %579 = vperm.xlu2 %897, %v574_v59  }
  0xe5   :  { %v256_v46 = vadd.f32 %v255_v25, %v237_v1  ;;  %929 = vrcp.f32 %v290_v2  ;;  %896 = vset.pattern.permute.xlu1 %v996_v4  ;;  %v367_v25 = vadd.f32 %v1194_v49, %v362_v53  ;;  %v636_v1 = vld [vmem:[%s1437_s3 + $0x50] sm:$0xff] }
  0xe6   :  { %567 = vperm.xlu1 %896, %v513_v7   ;;  %v305_v6 = vpop.permute.xlu1 %304  ;;  %v320_v11 = vpop.permute.xlu0 %319 }
  0xe7   :  { %v307_v15 = vadd.f32 %v305_v6, %v302_v43  ;;  %v262_v0 = vadd.f32 %v1273_v32, %v256_v46  ;;  %v368_v36 = vmul.f32 %v367_v25, %v367_v25 }
  0xe8   :  { %v380_v18 = vpop.permute.xlu2 %379 }
  0xe9   :  { %v308_v19 = vmul.f32 %v307_v15, %v307_v15  ;;  %v263_v20 = vmul.f32 0.05, %v262_v0  ;;  %v369_v49 = vadd.f32 1.0, %v368_v36 }
  0xeb   :  { %v930_v21 = vpop.eup %929  ;;  %v309_v51 = vadd.f32 1.0, %v308_v19  ;;  %v264_v22 = vmax.f32 %v262_v0, %v263_v20 }
  0xec   :  { %v297_v24 = vmul.f32 %v930_v21, %v295_v10  ;;  %898 = vset.pattern.permute.xlu2 %v995_v3 }
  0xed   :  { %931 = vrcp.f32 %v309_v51  ;;  %599 = vperm.xlu2 %898, %v574_v59   ;;  %v270_v32 = vmul.f32 %v268_v38, %v264_v22 }
  0xee   :  { %594 = vperm.xlu1 %896, %v576_v9  }
  0xef   :  { %v346_v26 = vpop.permute.xlu0 %345  ;;  %v328_v12 = vpop.permute.xlu1 %327  ;;  %v271_v28 = vadd.f32 %v270_v32, %v211_v61 }
  0xf0   :  { %v348_v30 = vadd.f32 %v346_v26, %v342_v23  ;;  %v400_v60 = vpop.permute.xlu2 %399 }
  0xf1   :  { %v402_v48 = vmul.f32 %v1250_v16, %v400_v60 }
  0xf2   :  { %v349_v33 = vmul.f32 %v348_v30, %v348_v30 }
  0xf3   :  { %v932_v5 = vpop.eup %931 }
  0xf4   :  { %v315_v44 = vmul.f32 %v932_v5, %v1322_v27  ;;  %v350_v39 = vadd.f32 1.0, %v349_v33  ;;  %v634_v27 = vld [vmem:[%s1435_s1 + $0x50] sm:$0xff] }
  0xf5   :  { %900 = vset.pattern.permute.xlu2 %v996_v4 }
  0xf6   :  { %v316_v38 = vadd.f32 %v315_v44, %v297_v24  ;;  %933 = vrcp.f32 %v350_v39  ;;  %899 = vset.pattern.permute.xlu1 %v995_v3  ;;  %619 = vperm.xlu2 %900, %v572_v37  }
  0xf7   :  { %612 = vperm.xlu1 %899, %v576_v9   ;;  %935 = vrcp.f32 %v369_v49  ;;  %v406_v54 = vpop.permute.xlu0 %405  ;;  %v695_v9 = vld [vmem:[%s1436_s2 + $0x58] sm:$0xff] }
  0xf8   :  { %v322_v41 = vadd.f32 %v320_v11, %v316_v38  ;;  %v355_v42 = vpop.permute.xlu1 %354  ;;  %v408_v10 = vadd.f32 %v406_v54, %v402_v48 }
  0xf9   :  { %v420_v45 = vpop.permute.xlu2 %419 }
  0xfa   :  { %v323_v47 = vmul.f32 0.05, %v322_v41  ;;  %v409_v31 = vmul.f32 %v408_v10, %v408_v10  ;;  %v422_v23 = vmul.f32 %v1170_v35, %v420_v45 }
  0xfc   :  { %v934_v50 = vpop.eup %933  ;;  %v324_v52 = vmax.f32 %v322_v41, %v323_v47  ;;  %v410_v2 = vadd.f32 1.0, %v409_v31 }
  0xfd   :  { %v357_v17 = vmul.f32 %v934_v50, %v355_v42  ;;  %v936_v56 = vpop.eup %935 }
  0xfe   :  { %v330_v55 = vmul.f32 %v328_v12, %v324_v52  ;;  %639 = vperm.xlu2 %900, %v634_v27   ;;  %937 = vrcp.f32 %v410_v2  ;;  %v754_v12 = vld [vmem:[%s1435_s1 + $0x60] sm:$0xff] }
  0xff   :  { %901 = vset.pattern.permute.xlu1 %v996_v4  ;;  %v440_v19 = vpop.permute.xlu0 %439 }
 0x100   :  { %v331_v34 = vadd.f32 %v330_v55, %v271_v28  ;;  %627 = vperm.xlu1 %901, %v573_v13  }
 0x101   :  { %v373_v58 = vpop.permute.xlu1 %372  ;;  %v433_v61 = vpop.permute.xlu2 %432 }
 0x102   :  { %v375_v59 = vmul.f32 %v936_v56, %v373_v58  ;;  %v756_v56 = vld [vmem:[%s1437_s3 + $0x60] sm:$0xff] }
 0x104   :  { %v376_v62 = vadd.f32 %v375_v59, %v357_v17  ;;  %v938_v20 = vpop.eup %937 }
 0x106   :  { %902 = vset.pattern.permute.xlu2 %v995_v3  ;;  %v382_v7 = vadd.f32 %v380_v18, %v376_v62 }
 0x107   :  { %659 = vperm.xlu2 %902, %v634_v27   ;;  %v466_v22 = vpop.permute.xlu0 %465 }
 0x108   :  { %654 = vperm.xlu1 %901, %v636_v1   ;;  %v383_v43 = vmul.f32 0.05, %v382_v7 }
 0x10a   :  { %v388_v46 = vpop.permute.xlu1 %387  ;;  %v384_v6 = vmax.f32 %v382_v7, %v383_v43  ;;  %v460_v11 = vpop.permute.xlu2 %459  ;;  %v633_v43 = vld [vmem:[%s1439_s5 + $0x50] sm:$0xff] }
 0x10b   :  { %v462_v51 = vmul.f32 %v1250_v16, %v460_v11 }
 0x10c   :  { %v390_v15 = vmul.f32 %v388_v46, %v384_v6  ;;  %v752_v6 = vld [vmem:[%s1438_s4 + $0x60] sm:$0xff] }
 0x10e   :  { %v391_v0 = vadd.f32 %v390_v15, %v331_v34 }
 0x10f   :  { %904 = vset.pattern.permute.xlu2 %v996_v4 }
 0x110   :  { %903 = vset.pattern.permute.xlu1 %v995_v3  ;;  %699 = vperm.xlu2 %904, %v1101_v14   ;;  %v468_v14 = vadd.f32 %v466_v22, %v462_v51 }
 0x111   :  { %664 = vperm.xlu1 %903, %v1271_v29  }
 0x112   :  { %v415_v18 = vpop.permute.xlu1 %414  ;;  %v469_v25 = vmul.f32 %v468_v14, %v468_v14 }
 0x113   :  { %v417_v21 = vmul.f32 %v938_v20, %v415_v18  ;;  %v480_v53 = vpop.permute.xlu2 %479  ;;  %v753_v18 = vld [vmem:[%s1439_s5 + $0x60] sm:$0xff] }
 0x114   :  { %v482_v28 = vmul.f32 %v1170_v35, %v480_v53  ;;  %v470_v60 = vadd.f32 1.0, %v469_v25 }
 0x116   :  { %v487_v33 = vadd.f32 %v1206_v57, %v482_v28  ;;  %v696_v57 = vld [vmem:[%s1437_s3 + $0x58] sm:$0xff] }
 0x118   :  { %907 = vset.pattern.permute.xlu2 %v995_v3  ;;  %v488_v37 = vmul.f32 %v487_v33, %v487_v33 }
 0x119   :  { %906 = vset.pattern.permute.xlu1 %v996_v4  ;;  %724 = vperm.xlu2 %907, %v695_v9  }
 0x11a   :  { %705 = vperm.xlu1 %906, %v695_v9   ;;  %v489_v38 = vadd.f32 1.0, %v488_v37 }
 0x11b   :  { %v425_v29 = vpop.permute.xlu1 %424 }
 0x11c   :  { %v427_v24 = vadd.f32 %v425_v29, %v422_v23  ;;  %v500_v32 = vpop.permute.xlu2 %499 }
 0x11e   :  { %v428_v26 = vmul.f32 %v427_v24, %v427_v24 }
 0x120   :  { %v429_v30 = vadd.f32 1.0, %v428_v26 }
 0x121   :  { %779 = vperm.xlu2 %907, %v754_v12  }
 0x122   :  { %939 = vrcp.f32 %v429_v30  ;;  %759 = vperm.xlu1 %906, %v754_v12  }
 0x123   :  { %941 = vrcp.f32 %v470_v60 }
 0x124   :  { %v448_v5 = vpop.permute.xlu1 %447  ;;  %v520_v36 = vpop.permute.xlu2 %519  ;;  %943 = vrcp.f32 %v489_v38 }
 0x125   :  { %v522_v50 = vmul.f32 %v1250_v16, %v520_v36 }
 0x128   :  { %v940_v44 = vpop.eup %939 }
 0x129   :  { %v435_v39 = vmul.f32 %v940_v44, %v433_v61  ;;  %672 = vperm.xlu2 %907, %v636_v1   ;;  %v942_v41 = vpop.eup %941 }
 0x12a   :  { %908 = vset.pattern.permute.xlu1 %v995_v3  ;;  %v526_v3 = vpop.permute.xlu0 %525  ;;  %v944_v17 = vpop.eup %943 }
 0x12b   :  { %v436_v49 = vadd.f32 %v435_v39, %v417_v21  ;;  %784 = vperm.xlu1 %908, %v1283_v40   ;;  %v528_v40 = vadd.f32 %v526_v3, %v522_v50 }
 0x12c   :  { %v475_v42 = vpop.permute.xlu1 %474 }
 0x12d   :  { %v442_v45 = vadd.f32 %v440_v19, %v436_v49  ;;  %v477_v47 = vmul.f32 %v942_v41, %v475_v42  ;;  %v540_v48 = vpop.permute.xlu2 %539  ;;  %v529_v58 = vmul.f32 %v528_v40, %v528_v40 }
 0x12e   :  { %v542_v53 = vmul.f32 %v1170_v35, %v540_v48 }
 0x12f   :  { %v443_v27 = vmul.f32 0.05, %v442_v45  ;;  %v530_v59 = vadd.f32 1.0, %v529_v58 }
 0x131   :  { %v444_v52 = vmax.f32 %v442_v45, %v443_v27  ;;  %732 = vperm.xlu2 %907, %v696_v57   ;;  %945 = vrcp.f32 %v530_v59 }
 0x132   :  { %v560_v21 = vpop.permute.xlu0 %559 }
 0x133   :  { %v450_v54 = vmul.f32 %v448_v5, %v444_v52  ;;  %909 = vset.pattern.permute.xlu1 %v996_v4 }
 0x134   :  { %714 = vperm.xlu1 %909, %v696_v57  }
 0x135   :  { %v451_v13 = vadd.f32 %v450_v54, %v391_v0  ;;  %v493_v55 = vpop.permute.xlu1 %492  ;;  %v553_v10 = vpop.permute.xlu2 %552 }
 0x136   :  { %v495_v34 = vmul.f32 %v944_v17, %v493_v55 }
 0x137   :  { %v946_v15 = vpop.eup %945 }
 0x138   :  { %v496_v61 = vadd.f32 %v495_v34, %v477_v47 }
 0x139   :  { %792 = vperm.xlu2 %907, %v756_v56  }
 0x13a   :  { %v502_v31 = vadd.f32 %v500_v32, %v496_v61  ;;  %v586_v24 = vpop.permute.xlu0 %585 }
 0x13c   :  { %774 = vperm.xlu1 %909, %v756_v56   ;;  %v503_v62 = vmul.f32 0.05, %v502_v31 }
 0x13e   :  { %v508_v1 = vpop.permute.xlu1 %507  ;;  %v504_v2 = vmax.f32 %v502_v31, %v503_v62  ;;  %v580_v7 = vpop.permute.xlu2 %579 }
 0x13f   :  { %v582_v9 = vmul.f32 %v1250_v16, %v580_v7 }
 0x140   :  { %v510_v46 = vmul.f32 %v508_v1, %v504_v2 }
 0x141   :  { %910 = vset.pattern.permute.xlu2 %v996_v4  ;;  %v588_v32 = vadd.f32 %v586_v24, %v582_v9 }
 0x142   :  { %v511_v11 = vadd.f32 %v510_v46, %v451_v13  ;;  %687 = vperm.xlu2 %910, %v633_v43   ;;  %v646_v62 = vpop.permute.xlu0 %645 }
 0x143   :  { %v589_v12 = vmul.f32 %v588_v32, %v588_v32 }
 0x144   :  { %799 = vperm.xlu1 %909, %v752_v6  }
 0x145   :  { %v590_v5 = vadd.f32 1.0, %v589_v12 }
 0x146   :  { %v535_v0 = vpop.permute.xlu1 %534 }
 0x147   :  { %v537_v19 = vmul.f32 %v946_v15, %v535_v0  ;;  %v600_v20 = vpop.permute.xlu2 %599 }
 0x148   :  { %v602_v14 = vmul.f32 %v1170_v35, %v600_v20 }
 0x14a   :  { %v607_v25 = vadd.f32 %v1217_v63, %v602_v14  ;;  %v766_v15 = vpop.permute.xlu0 %765 }
 0x14c   :  { %807 = vperm.xlu1 %909, %v753_v18   ;;  %v608_v28 = vmul.f32 %v607_v25, %v607_v25 }
 0x14e   :  { %v609_v36 = vadd.f32 1.0, %v608_v28 }
 0x14f   :  { %v545_v4 = vpop.permute.xlu1 %544 }
 0x150   :  { %v547_v51 = vadd.f32 %v545_v4, %v542_v53  ;;  %v620_v23 = vpop.permute.xlu2 %619 }
 0x152   :  { %v548_v22 = vmul.f32 %v547_v51, %v547_v51  ;;  %v680_v24 = vpop.permute.xlu0 %679 }
 0x154   :  { %v549_v29 = vadd.f32 1.0, %v548_v22 }
 0x156   :  { %947 = vrcp.f32 %v549_v29 }
 0x157   :  { %949 = vrcp.f32 %v590_v5 }
 0x158   :  { %v568_v26 = vpop.permute.xlu1 %567  ;;  %v640_v60 = vpop.permute.xlu2 %639  ;;  %951 = vrcp.f32 %v609_v36 }
 0x159   :  { %v642_v31 = vmul.f32 %v1250_v16, %v640_v60 }
 0x15b   :  { %v648_v1 = vadd.f32 %v646_v62, %v642_v31 }
 0x15c   :  { %v948_v30 = vpop.eup %947 }
 0x15d   :  { %v555_v33 = vmul.f32 %v948_v30, %v553_v10  ;;  %v950_v45 = vpop.eup %949  ;;  %v649_v46 = vmul.f32 %v648_v1, %v648_v1 }
 0x15e   :  { %v952_v47 = vpop.eup %951 }
 0x15f   :  { %v556_v37 = vadd.f32 %v555_v33, %v537_v19  ;;  %v650_v0 = vadd.f32 1.0, %v649_v46 }
 0x160   :  { %v595_v44 = vpop.permute.xlu1 %594 }
 0x161   :  { %v562_v39 = vadd.f32 %v560_v21, %v556_v37  ;;  %v660_v49 = vpop.permute.xlu2 %659  ;;  %v597_v57 = vmul.f32 %v950_v45, %v595_v44 }
 0x162   :  { %v662_v61 = vmul.f32 %v1170_v35, %v660_v49 }
 0x163   :  { %v563_v38 = vmul.f32 0.05, %v562_v39 }
 0x165   :  { %v564_v41 = vmax.f32 %v562_v39, %v563_v38  ;;  %v740_v39 = vpop.permute.xlu0 %739 }
 0x167   :  { %v570_v42 = vmul.f32 %v568_v26, %v564_v41 }
 0x169   :  { %v571_v63 = vadd.f32 %v570_v42, %v511_v11  ;;  %v613_v48 = vpop.permute.xlu1 %612  ;;  %v722_v11 = vmul.f32 %v1170_v35, %v1233_v8 }
 0x16a   :  { %v615_v27 = vmul.f32 %v952_v47, %v613_v48  ;;  %v700_v52 = vpop.permute.xlu2 %699 }
 0x16b   :  { %v702_v19 = vmul.f32 %v1250_v16, %v700_v52 }
 0x16c   :  { %v616_v50 = vadd.f32 %v615_v27, %v597_v57 }
 0x16e   :  { %v622_v3 = vadd.f32 %v620_v23, %v616_v50 }
 0x170   :  { %v623_v54 = vmul.f32 0.05, %v622_v3 }
 0x172   :  { %v628_v40 = vpop.permute.xlu1 %627  ;;  %v624_v17 = vmax.f32 %v622_v3, %v623_v54 }
 0x173   :  { %v725_v10 = vpop.permute.xlu2 %724 }
 0x174   :  { %v630_v13 = vmul.f32 %v628_v40, %v624_v17  ;;  %v727_v20 = vadd.f32 %v725_v10, %v722_v11  ;;  %v748_v40 = vpop.permute.xlu0 %747 }
 0x176   :  { %v1418_v55 = vadd.f32 %v630_v13, %v571_v63  ;;  %v728_v4 = vmul.f32 %v727_v20, %v727_v20 }
 0x178   :  { %v729_v23 = vadd.f32 1.0, %v728_v4 }
 0x17a   :  { %v655_v34 = vpop.permute.xlu1 %654 }
 0x17b   :  { %v780_v56 = vpop.permute.xlu2 %779 }
 0x17c   :  { %v782_v8 = vmul.f32 %v1170_v35, %v780_v56 }
 0x183   :  { %v665_v58 = vpop.permute.xlu1 %664  ;;  %v673_v7 = vpop.permute.xlu2 %672 }
 0x184   :  { %v667_v59 = vadd.f32 %v665_v58, %v662_v61 }
 0x186   :  { %v668_v2 = vmul.f32 %v667_v59, %v667_v59 }
 0x188   :  { %v669_v6 = vadd.f32 1.0, %v668_v2 }
 0x18a   :  { %953 = vrcp.f32 %v669_v6 }
 0x18b   :  { %955 = vrcp.f32 %v650_v0  ;;  %v733_v53 = vpop.permute.xlu2 %732 }
 0x18c   :  { %v706_v43 = vpop.permute.xlu1 %705  ;;  %957 = vrcp.f32 %v729_v23 }
 0x18d   :  { %v708_v18 = vadd.f32 %v706_v43, %v702_v19 }
 0x18f   :  { %v709_v9 = vmul.f32 %v708_v18, %v708_v18 }
 0x190   :  { %v954_v51 = vpop.eup %953 }
 0x191   :  { %v675_v14 = vmul.f32 %v954_v51, %v673_v7  ;;  %v956_v29 = vpop.eup %955  ;;  %v710_v32 = vadd.f32 1.0, %v709_v9 }
 0x192   :  { %v657_v25 = vmul.f32 %v956_v29, %v655_v34  ;;  %v958_v37 = vpop.eup %957 }
 0x193   :  { %959 = vrcp.f32 %v710_v32  ;;  %v793_v60 = vpop.permute.xlu2 %792  ;;  %v735_v41 = vmul.f32 %v958_v37, %v733_v53 }
 0x194   :  { %v760_v21 = vpop.permute.xlu1 %759  ;;  %v676_v30 = vadd.f32 %v675_v14, %v657_v25 }
 0x195   :  { %v762_v22 = vmul.f32 %v1250_v16, %v760_v21 }
 0x196   :  { %v682_v36 = vadd.f32 %v680_v24, %v676_v30 }
 0x197   :  { %v768_v26 = vadd.f32 %v766_v15, %v762_v22 }
 0x198   :  { %v683_v35 = vmul.f32 0.05, %v682_v36 }
 0x199   :  { %v769_v33 = vmul.f32 %v768_v26, %v768_v26  ;;  %v960_v44 = vpop.eup %959 }
 0x19a   :  { %v684_v63 = vmax.f32 %v682_v36, %v683_v35 }
 0x19b   :  { %v770_v16 = vadd.f32 1.0, %v769_v33 }
 0x19c   :  { %v688_v47 = vpop.permute.xlu2 %687 }
 0x19d   :  { %v785_v12 = vpop.permute.xlu1 %784  ;;  %961 = vrcp.f32 %v770_v16  ;;  %v690_v57 = vmul.f32 %v688_v47, %v684_v63 }
 0x19e   :  { %v787_v28 = vadd.f32 %v785_v12, %v782_v8 }
 0x19f   :  { %v691_v17 = vadd.f32 %v690_v57, %v1418_v55  ;;  %v819_v55 = vstv %s1440_s6  ;;  %s848_s6 = sshll.u32 %s1441_s7, 4  ;;  %s849_s6 = int_to_ptr.hbm [resolvable:$true] %s848_s6 }
 0x1a0   :  { %v788_v5 = vmul.f32 %v787_v28, %v787_v28 }
 0x1a2   :  { %v789_v38 = vadd.f32 1.0, %v788_v5 }
 0x1a3   :  { %v962_v52 = vpop.eup %961 }
 0x1a4   :  { %963 = vrcp.f32 %v789_v38 }
 0x1a6   :  { %v715_v49 = vpop.permute.xlu1 %714 }
 0x1a7   :  { %v717_v42 = vmul.f32 %v960_v44, %v715_v49 }
 0x1a9   :  { %v736_v45 = vadd.f32 %v735_v41, %v717_v42 }
 0x1aa   :  { %v964_v54 = vpop.eup %963 }
 0x1ab   :  { %v742_v48 = vadd.f32 %v740_v39, %v736_v45  ;;  %v795_v34 = vmul.f32 %v964_v54, %v793_v60 }
 0x1ad   :  { %v743_v27 = vmul.f32 0.05, %v742_v48 }
 0x1ae   :  { %v775_v50 = vpop.permute.xlu1 %774 }
 0x1af   :  { %v744_v3 = vmax.f32 %v742_v48, %v743_v27  ;;  %v777_v13 = vmul.f32 %v962_v52, %v775_v50 }
 0x1b1   :  { %v750_v10 = vmul.f32 %v748_v40, %v744_v3  ;;  %v796_v58 = vadd.f32 %v795_v34, %v777_v13 }
 0x1b3   :  { %v751_v56 = vadd.f32 %v750_v10, %v691_v17 }
 0x1b6   :  { %v800_v61 = vpop.permute.xlu1 %799 }
 0x1b7   :  { %v802_v31 = vadd.f32 %v800_v61, %v796_v58 }
 0x1b9   :  { %v803_v59 = vmul.f32 0.05, %v802_v31 }
 0x1bb   :  { %v804_v62 = vmax.f32 %v802_v31, %v803_v59 }
 0x1be   :  { %v808_v1 = vpop.permute.xlu1 %807 }
 0x1bf   :  { %v810_v2 = vmul.f32 %v808_v1, %v804_v62 }
 0x1c1   :  { %v811_v7 = vadd.f32 %v810_v2, %v751_v56 }
 0x1c3   :  { %v812_v43 = vrot.slane %v811_v7, 4 }
 0x1c5   :  { %v813_v46 = vadd.f32 %v812_v43, %v811_v7 }
 0x1c7   :  { %v814_v6 = vrot.slane %v813_v46, 2 }
 0x1c9   :  { %v815_v11 = vadd.f32 %v814_v6, %v813_v46 }
 0x1cb   :  { %v816_v15 = vrot.slane %v815_v11, 1 }
 0x1cd   :  { %v817_v0 = vadd.f32 %v816_v15, %v815_v11 }
 0x1cf   :  { %v820_v19 = vadd.f32 %v819_v55, %v817_v0 }
 0x1d1   :  { %v821_v20 = vsub.f32 0.0, %v820_v19 }
 0x1d3   :  { %v822_v18 = vmul.f32 1.442695, %v821_v20 }
 0x1d5   :  { %965 = vpow2.f32 %v822_v18 }
 0x1db   :  { %v966_v21 = vpop.eup %965 }
 0x1dc   :  { %v824_v53 = vadd.f32 1.0, %v966_v21 }
 0x1de   :  { %967 = vrcp.f32 %v824_v53  ;;  %v836_v22 = vand.u32 2147483648, %v824_v53  ;;  %v834_v14 = vand.u32 2147483647, %v824_v53  ;;  %vm830_vm1 = vweird.f32 %v824_v53 }
 0x1e0   :  { %v837_v24 = vor.u32 1.1754944e-38, %v836_v22  ;;  %vm835_vm3 = vcmp.eq.f32.partialorder %v834_v14, 8.507059e+37 }
 0x1e4   :  { %v968_v4 = vpop.eup %967 }
 0x1e5   :  { %v826_v51 = vmul.f32 %v968_v4, %v824_v53  ;;  %vm831_vm0 = vweird.f32 %v968_v4 }
 0x1e6   :  { %vm832_vm2 = vmor %vm830_vm1, %vm831_vm0 }
 0x1e7   :  { %v827_v9 = vsub.f32 1.0, %v826_v51 }
 0x1e9   :  { %v828_v23 = vmul.f32 %v968_v4, %v827_v9 }
 0x1eb   :  { %v829_v29 = vadd.f32 %v968_v4, %v828_v23 }
 0x1ed   :  { %v833_v8 = vsel %vm832_vm2, %v968_v4, %v829_v29 }
 0x1ee   :  { %v838_v32 = vsel %vm835_vm3, %v837_v24, %v833_v8 }
 0x1ef   :  { %840 = vst [vmem:[#allocation3] sm:$0x1] %v838_v32 }
 0x1f0   :  { %851 = dma.vmem_to_hbm [thread:$0]  %s847_s0, 16, %s849_s6, [#allocation4]  }
 0x1f1   :  { %993 = dma.done.wait [#allocation4], 16  }
 0x1f2   :  { %994 = vsyncadd [#allocation4], 4294967280 }
 0x1f3   :  { %856 = vsyncpa [#allocation4], 1 }

</bundles_post_ra>
